<compile_context>
chip_gen: v7x
topology: tpu7x:2x2x1
jax: 0.10.0
libtpu: 0.0.40
codegen_flags: <defaults>
</compile_context>

<pallas_src>
import jax
import jax.numpy as jnp
import numpy as np
from jax.experimental import pallas as pl
from jax.experimental.pallas import tpu as pltpu


def _linear_kernel(x_ref, w_ref, b_ref, o_ref):
    """One (bm, bn) output tile:  o = x @ w.T + b, with w in nn.Linear layout."""
    w = w_ref[...]                                   # (bn, K)
    x = x_ref[...].astype(w.dtype)                   # (bm, K)
    precision = (jax.lax.Precision.HIGHEST
                 if w.dtype == jnp.float32 else None)
    acc = jax.lax.dot_general(
        x, w,
        dimension_numbers=(((1,), (1,)), ((), ())),  # contract on K, no transpose
        preferred_element_type=jnp.float32,
        precision=precision,
    )                                                # (bm, bn) f32
    o_ref[...] = (acc + b_ref[...].astype(jnp.float32)).astype(o_ref.dtype)


def _pick_bn(N):
    """Lane-dense d_model tile: largest multiple-of-128 divisor of N, <= 512,
    preferring >= 2 grid steps along this (parallel) axis for v7x's 2 TCs."""
    if N % 128 != 0:
        return N                       # full-extent block: no (8,128) requirement
    bn = N
    for c in (512, 384, 256, 128):
        if c <= N and N % c == 0:
            bn = c
            break
    if N // bn == 1 and N >= 256 and (N // 2) % 128 == 0:
        bn = N // 2                    # give v7x two parallel steps
    return bn


def _pick_bm(B):
    """Pack the whole batch into one MXU M block when reasonable."""
    if B <= 1024:
        return B                       # full-extent block: no divisibility rule
    for c in range(1024, 7, -8):       # largest multiple-of-8 divisor <= 1024
        if B % c == 0:
            return c
    return B


def dino_image_embedding(x, weight, bias):
    """Pallas implementation of DinoImageEmbedding.forward.

    x:      [B, dino_dim]
    weight: [d_model, dino_dim]   (PyTorch nn.Linear layout; may be pre-cast to
                                   bf16 once at init for the HBM-bound fast path)
    bias:   [d_model]
    returns [B, 1, d_model]       (== projection_layer(x.unsqueeze(1)))
    """
    B, K = x.shape
    N, K_w = weight.shape
    assert K_w == K, "weight in_features must match x's last dim"
    assert bias.shape == (N,), "bias must have shape [d_model]"

    b2d = bias.reshape(1, N)           # metadata-only reshape

    bm = _pick_bm(B)
    bn = _pick_bn(N)
    grid = (N // bn, B // bm)          # batch innermost: weight streams once

    # Explicit scoped-VMEM budget: double-buffered blocks + headroom.
    blk_bytes = (bm * K * x.dtype.itemsize
                 + bn * K * weight.dtype.itemsize
                 + bn * bias.dtype.itemsize
                 + bm * bn * x.dtype.itemsize)
    vmem_limit = int(min(max(4 * blk_bytes + (2 << 20), 8 << 20), 64 << 20))

    out2d = pl.pallas_call(
        _linear_kernel,
        out_shape=jax.ShapeDtypeStruct((B, N), x.dtype),
        grid=grid,
        in_specs=[
            pl.BlockSpec((bm, K), lambda j, i: (i, 0)),   # activations (inner axis)
            pl.BlockSpec((bn, K), lambda j, i: (j, 0)),   # nn.Linear weight (outer axis)
            pl.BlockSpec((1, bn), lambda j, i: (0, j)),   # bias
        ],
        out_specs=pl.BlockSpec((bm, bn), lambda j, i: (i, j)),
        compiler_params=pltpu.CompilerParams(
            dimension_semantics=("parallel", "parallel"),
            vmem_limit_bytes=vmem_limit),
    )(x, weight, b2d)

    # unsqueeze(1): pure metadata reshape, no data movement.
    return out2d.reshape(B, 1, N)


if __name__ == "__main__":
    # Small shapes consistent with the module (DINO feature dim -> model dim).
    B, dino_dim, d_model = 8, 384, 256

    key = jax.random.PRNGKey(0)
    kx, kw, kb = jax.random.split(key, 3)
    x = jax.random.normal(kx, (B, dino_dim), dtype=jnp.float32)
    # PyTorch nn.Linear layout: weight [out_features, in_features], bias [out_features]
    weight = (0.05 * jax.random.normal(kw, (d_model, dino_dim))).astype(jnp.float32)
    bias = (0.02 * jax.random.normal(kb, (d_model,))).astype(jnp.float32)

    out = jax.block_until_ready(dino_image_embedding(x, weight, bias))

    # Pure-JAX reference of the PyTorch forward: Linear(x.unsqueeze(1)).
    ref = jnp.einsum("bsk,nk->bsn", x[:, None, :], weight,
                     precision=jax.lax.Precision.HIGHEST) + bias
    ref = jax.block_until_ready(ref)

    assert out.shape == (B, 1, d_model)
    assert np.allclose(np.asarray(out), np.asarray(ref), atol=1e-4, rtol=1e-4), (
        "Pallas kernel does not match reference")
    print("KERNEL_OK")
</pallas_src>

<mosaic_0001>
module attributes {stable_mosaic.version = 11 : i64} {
  func.func @_linear_kernel(%arg0: i32, %arg1: i32, %arg2: memref<8x384xf32, #tpu.memory_space<vmem>>, %arg3: memref<128x384xf32, #tpu.memory_space<vmem>>, %arg4: memref<1x128xf32, #tpu.memory_space<vmem>>, %arg5: memref<8x128xf32, #tpu.memory_space<vmem>>) attributes {dimension_semantics = [#tpu.dimension_semantics<parallel>, #tpu.dimension_semantics<parallel>], iteration_bounds = array<i64: 2, 1>, scalar_prefetch = 0 : i64, scratch_operands = 0 : i64, tpu.core_type = #tpu.core_type<tc>, window_params = [{transform_indices = @transform_0, window_bounds = array<i64: 8, 384>}, {transform_indices = @transform_1, window_bounds = array<i64: 128, 384>}, {transform_indices = @transform_2, window_bounds = array<i64: 1, 128>}, {transform_indices = @transform_3, window_bounds = array<i64: 8, 128>}]} {
    %c0 = arith.constant 0 : index
    %c0_0 = arith.constant 0 : index
    %0 = vector.load %arg3[%c0, %c0_0] : memref<128x384xf32, #tpu.memory_space<vmem>>, vector<128x384xf32>
    %c0_1 = arith.constant 0 : index
    %c0_2 = arith.constant 0 : index
    %1 = vector.load %arg2[%c0_1, %c0_2] : memref<8x384xf32, #tpu.memory_space<vmem>>, vector<8x384xf32>
    %cst = arith.constant dense<0.000000e+00> : vector<8x128xf32>
    %2 = tpu.matmul %1, %0, %cst {dimension_numbers = #tpu.dot_dimension_numbers<[1], [1], [0], [0], [0, 0, 1, 0], [], []>, precision = #tpu.contract_precision<fp32>} : vector<8x384xf32>, vector<128x384xf32>, vector<8x128xf32> -> vector<8x128xf32>
    %c0_3 = arith.constant 0 : index
    %c0_4 = arith.constant 0 : index
    %3 = vector.load %arg4[%c0_3, %c0_4] : memref<1x128xf32, #tpu.memory_space<vmem>>, vector<1x128xf32>
    %4 = vector.broadcast %3 : vector<1x128xf32> to vector<8x128xf32>
    %5 = arith.addf %2, %4 : vector<8x128xf32>
    %c0_5 = arith.constant 0 : index
    %c0_6 = arith.constant 0 : index
    %6 = vector.load %arg5[%c0_5, %c0_6] : memref<8x128xf32, #tpu.memory_space<vmem>>, vector<8x128xf32>
    tpu.vector_store %arg5[%c0_5, %c0_6], %5 {strides = array<i32>} : memref<8x128xf32, #tpu.memory_space<vmem>>, vector<8x128xf32>,
    return
  }
  func.func @transform_0(%arg0: i32, %arg1: i32) -> (i32, i32) {
    %c0_i32 = arith.constant 0 : i32
    %c0_i32_0 = arith.constant 0 : i32
    return %arg1, %c0_i32 : i32, i32
  }
  func.func @transform_1(%arg0: i32, %arg1: i32) -> (i32, i32) {
    %c0_i32 = arith.constant 0 : i32
    %c0_i32_0 = arith.constant 0 : i32
    return %arg0, %c0_i32 : i32, i32
  }
  func.func @transform_2(%arg0: i32, %arg1: i32) -> (i32, i32) {
    %c0_i32 = arith.constant 0 : i32
    %c0_i32_0 = arith.constant 0 : i32
    return %c0_i32, %arg0 : i32, i32
  }
  func.func @transform_3(%arg0: i32, %arg1: i32) -> (i32, i32) {
    %c0_i32 = arith.constant 0 : i32
    return %arg1, %arg0 : i32, i32
  }
}

</mosaic_0001>

<bundles_post_ra>
// kernel: tpu_custom_call.1
= control target key start
LH: loop header
LB: loop body
LE: loop exit
PB: predicated region body
PF: predicated region fallthrough
CT: control target
= control target key end

     0   :  { %8 = vsyncpa [#allocation3], 0  ;;  %s4246_s0 = inlined_call_operand.hbm [shape: f32[8,384], index: 0, kind: input, shape index: {}]   ;;  %s4247_s1 = inlined_call_operand.hbm [shape: f32[256,384], index: 1, kind: input, shape index: {}]   ;;  %s4248_s2 = inlined_call_operand.vmem [shape: f32[1,256], index: 2, kind: input, shape index: {}]   ;;  %s4249_s3 = inlined_call_operand.hbm [shape: f32[8,256], index: 3, kind: output, shape index: {}]  }
   0x1   :  { %9 = vsyncpa [#allocation6], 0 }
   0x2   :  { %11 = vsyncpa [#allocation6 + $0x1], 0 }
   0x3   :  { %12 = vsyncpa [#allocation4], 0 }
   0x4   :  { %14 = vsyncpa [#allocation4 + $0x1], 0  ;;  %s2862_s12 = smov 0   ;;  %s2864_s13 = smov 0  }
   0x5   :  { %s2866_s14 = smov 0   ;;  %s2868_s15 = smov 0  }
   0x6   :  { %s2870_s16 = smov 0   ;;  %s2872_s17 = smov 0  }
   0x7 LB: > { %s1921_s18 = sadd.s32 4294967295, %s2832_s17   ;;  %s1922_s19 = sadd.s32 4294967294, %s2832_s17   ;;  %s2832_s17 = sphi %s2872_s17, %s20_s17   ;;  %s2828_s16 = sphi %s2870_s16, %s4708_s16   ;;  %s2824_s15 = sphi %s2868_s15, %s4707_s15   ;;  %s2820_s14 = sphi %s2866_s14, %s4706_s14   ;;  %s2816_s13 = sphi %s2864_s13, %s4705_s13   ;;  %s2812_s12 = sphi %s2862_s12, %s4704_s12  }
   0x8   : > { %s65_s20 = sadd.s32 1, %s2820_s14  ;;  %p72_p0 = scmp.ne.s32.totalorder %s2820_s14, %s2816_s13 }
   0x9   : > { %p73_p1 = scmp.eq.s32.totalorder %s2832_s17, 0  ;;  %p78_p2 = scmp.ne.s32.totalorder %s2816_s13, %s2812_s12 }
   0xa   : > { %p2900_p3 = scmp.eq.s32.totalorder %s1921_s18, 0  ;;  %p130_p4 = scmp.eq.s32.totalorder %s1921_s18, 1 }
   0xb   : > { %p2904_p5 = por %p73_p1, %p72_p0  ;;  %p136_p6 = scmp.eq.s32.totalorder %s1922_s19, 1 }
   0xc   : > { %s4403_s21 = scalar_select %p2900_p3, 1, 0 }
   0xd   : > { %p2910_p7 = por %p2900_p3, %p78_p2  ;;  %p2914_p8 = por %p130_p4, %p72_p0 }
   0xe   : > { %p2918_p9 = por %p136_p6, %p78_p2  ;;  %p1923_p10 = scmp.ge.s32.totalorder %s2832_s17, 1 }
   0xf   : > { %s4405_s23 = scalar_select %p2910_p7, 1, 0 }
  0x10   : > { %s4406_s24 = scalar_select %p2914_p8, 1, 0 }
  0x11   : > { %s4407_s25 = scalar_select %p2918_p9, 1, 0 }
  0x12   : > { %p143_p11 = scmp.lt.s32.totalorder %s2832_s17, 3  ;;  %s2834_s27 = smov [#allocation2]  }
  0x13   : > { %s159_s28 = sshll.u32 %s2834_s27, 4  ;;  %p2631_p1 = scmp.lt.s32.totalorder %s2832_s17, 2  ;;  %s160_s28 = int_to_ptr.vmem [resolvable:$true] %s159_s28 }
  0x14   : > { %p2925_p13 = pnand %p1923_p10, %p143_p11  ;;  %s32_s4 = sadd.s32 1, %s2828_s16 }
  0x15   : > { %p2934_p4 = pnand %p2631_p1, %p2904_p5  ;;  %p2945_p6 = scmp.ge.s32.totalorder %s32_s4, 2 }
  0x16   : > { %s4408_s26 = scalar_select %p2925_p13, 1, 0 }
  0x17   : > { %p2618_p0 = pneg %p2925_p13  ;;  %s170_s6 = sand.u32 1, %s2820_s14  }
  0x18   : > { %s4409_s29 = scalar_select %p2934_p4, 1, 0 }
  0x19   : > { %p2940_p2 = pnand %p2618_p0, %p2900_p3  ;;  %s2688_s9 = scalar_lea.hbm %s4246_s0, 384 }
  0x1a   : > { %s4411_s5 = scalar_select %p2945_p6, 1, 0 }
  0x1b   : > { %p2689_p5 = scmp.ne.s32.totalorder %s4246_s0, %s2688_s9  ;;  %p2690_p10 = pneg %p2940_p2 }
  0x1c   : > { %p2695_p0 = scmp.lt.u32.totalorder %s2688_s9, %s4246_s0 }
  0x1d   : > { %p2691_p11 = pnand %p2690_p10, %p2689_p5 }
  0x1f   : > { %p2692_p1 = pneg %p2691_p11 }
  0x21   : > { %p2697_p12 = pnand %p2695_p0, %p2692_p1 }
  0x23   : > { %2700 = shalt.err (!%p2697_p12)
}
  0x24   : > { %s2701_s22 = scalar_lea.vmem %s160_s28, 384  ;;  %p2709_p3 = scmp.lt.s32.totalorder %s160_s28, %s160_s28 }
  0x25   : > { %p2702_p9 = scmp.ne.s32.totalorder %s160_s28, %s2701_s22  ;;  %p2710_p13 = scmp.lt.s32.totalorder %s2701_s22, %s2701_s22 }
  0x27   : > { %p2704_p8 = pnand %p2702_p9, %p2690_p10  ;;  %p2711_p4 = por %p2710_p13, %p2709_p3 }
  0x29   : > { %p2705_p7 = pneg %p2704_p8 }
  0x2b   : > { %p2712_p6 = pnand %p2711_p4, %p2705_p7 }
  0x2d   : > { %2715 = shalt.err (!%p2712_p6)
}
  0x2e   : > { %2621 = dma.hbm_to_vmem [thread:$0]  (!%p2940_p2), %s4246_s0, 384, %s160_s28, [#allocation3]  }
  0x2f   : > { %p4412_p9 = scmp.ne.s32.totalorder %s4411_s5, 0  ;;  %s2607_s8 = smul.u32 384, %s170_s6 }
  0x30   : > { %s2608_s10 = smul.u32 6144, %s2828_s16  ;;  %s2985_s5 = scalar_lea.sflag [#allocation6], %s170_s6 }
  0x31   : > { %s4710_s4 = smov (%p4412_p9, %s32_s4), 0  ;;  %s174_s19 = scalar_lea.vmem [#allocation5], %s2607_s8 }
  0x32   : > { %s62_s9 = ssub.s32 %s2828_s16, %s4710_s4  ;;  %s2976_s18 = scalar_lea.hbm %s4247_s1, %s2608_s10 }
  0x33   : > { %p63_p3 = scmp.eq.s32.totalorder %s62_s9, 0  ;;  %s182_s22 = sshll.u32 %s174_s19, 4  ;;  %s2983_s22 = int_to_ptr.vmem [resolvable:$true] %s182_s22 }
  0x34   : > { %s2716_s27 = scalar_lea.hbm %s2976_s18, 6144  ;;  %p4413_p8 = scmp.ne.s32.totalorder %s4409_s29, 0 }
  0x35   : > { %s2981_s28 = scalar_select %p63_p3, %s2820_s14, %s65_s20  }
  0x36   : > { %p2717_p7 = scmp.ne.s32.totalorder %s2976_s18, %s2716_s27  ;;  %p2718_p12 = pneg %p4413_p8 }
  0x37   : > { %s2721_s8 = scalar_lea.hbm %s4247_s1, 12288  ;;  %p2722_p2 = scmp.lt.u32.totalorder %s2976_s18, %s4247_s1 }
  0x38   : > { %p2719_p13 = pnand %p2718_p12, %p2717_p7  ;;  %p2723_p6 = scmp.lt.u32.totalorder %s2721_s8, %s2716_s27 }
  0x39   : > { %p2725_p10 = scmp.lt.u32.totalorder %s2716_s27, %s2976_s18 }
  0x3a   : > { %p2720_p4 = pneg %p2719_p13  ;;  %p2724_p5 = por %p2723_p6, %p2722_p2 }
  0x3c   : > { %p2726_p11 = por %p2725_p10, %p2724_p5 }
  0x3e   : > { %p2727_p1 = pnand %p2726_p11, %p2720_p4 }
  0x40   : > { %2730 = shalt.err (!%p2727_p1)
}
  0x41   : > { %s2731_s20 = scalar_lea.vmem %s2983_s22, 6144  ;;  %s2835_s6 = smov [#allocation5]  }
  0x42   : > { %p2732_p0 = scmp.ne.s32.totalorder %s2983_s22, %s2731_s20  ;;  %s2736_s11 = sshll.u32 %s2835_s6, 4  ;;  %s2737_s11 = int_to_ptr.vmem [resolvable:$false] %s2736_s11 }
  0x43   : > { %s2738_s19 = scalar_lea.vmem %s2737_s11, 12288  ;;  %p2739_p7 = scmp.lt.s32.totalorder %s2983_s22, %s2737_s11 }
  0x44   : > { %p2734_p9 = pnand %p2732_p0, %p2718_p12  ;;  %p2740_p13 = scmp.lt.s32.totalorder %s2738_s19, %s2731_s20 }
  0x46   : > { %p2735_p3 = pneg %p2734_p9  ;;  %p2741_p2 = por %p2740_p13, %p2739_p7 }
  0x48   : > { %p2742_p6 = pnand %p2741_p2, %p2735_p3 }
  0x4a   : > { %2745 = shalt.err (!%p2742_p6)
}
  0x4b   : > { %s2836_s27 = smov 384   ;;  %s2837_s7 = smov 24  }
  0x4c   : > { %2625 = dma.hbm_to_vmem [thread:$0]  (!%p4413_p8), %s2976_s18, 6144, %s2983_s22, %s2985_s5, %s2836_s27, %s2836_s27, %s2837_s7  }
  0x4d   : > { %p4414_p12 = scmp.ne.s32.totalorder %s4408_s26, 0 }
  0x4f   : > { %200 = sbr.rel (%p4414_p12) target bundleno = 717 (0x2cd), region = 32 }
  0x56   : > { %p4415_p4 = scmp.ne.s32.totalorder %s4403_s21, 0 }
  0x58   : > { %2799 = dma.done.wait (%p4415_p4), [#allocation3], 384  }
  0x59   : > { %2801 = vsyncadd (%p4415_p4), [#allocation3], 4294966912  ;;  %s3020_s9 = sand.u32 1, %s2816_s13   ;;  %p4416_p8 = scmp.ne.s32.totalorder %s4405_s23, 0 }
  0x5a   : > { %s2609_s8 = smul.u32 384, %s3020_s9  ;;  %s207_s10 = scalar_lea.sflag [#allocation6], %s3020_s9 }
  0x5c   : > { %s3024_s30 = scalar_lea.vmem [#allocation5], %s2609_s8 }
  0x5d   : > { %2803 = dma.done.wait (%p4416_p8), %s207_s10, 6144  }
  0x5e   : > { %2805 = vsyncadd (%p4416_p8), %s207_s10, 4294961152  ;;  %v4278_v0 = vmov 0.0|0.0   ;;  %vm2839_vm0 = vmmov 0   ;;  %v4256_v1 = vmov 0.0   ;;  %v3034_v2 = vld [vmem:[%s3024_s30 + $0x8] sm:$0xff]  ;;  %v3037_v3 = vld [vmem:[%s3024_s30 + $0x20] sm:$0xff] }
  0x5f   : > { %2441 = vmatprep.subr.bf16.mxu0 %v4278_v0  ;;  %2071 = vmatprep.mubr.msk.f32.mxu0 %vm2839_vm0, %v4256_v1  ;;  %v3040_v4 = vld [vmem:[%s3024_s30 + $0x10] sm:$0xff]  ;;  %v298_v5 = vand.u32 4294901760, %v3034_v2  ;;  %v302_v6 = vand.u32 4294901760, %v3037_v3  ;;  %v3045_v7 = vld [vmem:[%s3024_s30 + $0x28] sm:$0xff]  ;;  %v3049_v9 = vld [vmem:[%s3024_s30] sm:$0xff]  ;;  %p237_p5 = scmp.lt.s32.totalorder %s2824_s15, 1 }
  0x60   : > { %v1161_v8 = vand.u32 4294901760, %v3040_v4  ;;  %v3052_v10 = vld [vmem:[%s3024_s30 + $0x18] sm:$0xff]  ;;  %v4288_v11 = vand.u32 4294901760, %v3045_v7  ;;  %v4285_v12 = vand.u32 4294901760, %v3049_v9  ;;  %v3061_v15 = vld [vmem:[%s3024_s30 + $0x50] sm:$0xff]  ;;  %v3064_v16 = vld [vmem:[%s3024_s30 + $0x40] sm:$0xff] }
  0x61   : > { %v4280_v13 = vand.u32 4294901760, %v3052_v10  ;;  %v3058_v14 = vld [vmem:[%s3024_s30 + $0x38] sm:$0xff]  ;;  %v3070_v17 = vpack.c.bf16 %v302_v6, %v298_v5  ;;  %v3076_v19 = vld [vmem:[%s3024_s30 + $0x30] sm:$0xff]  ;;  %v3079_v20 = vld [vmem:[%s3024_s30 + $0x48] sm:$0xff]  ;;  %v4276_v25 = vand.u32 4294901760, %v3061_v15  ;;  %v4275_v26 = vand.u32 4294901760, %v3064_v16 }
  0x62   : > { %v3073_v18 = vld [vmem:[%s3024_s30 + $0x58] sm:$0xff]  ;;  %v3085_v21 = vpack.c.bf16 %v4288_v11, %v1161_v8  ;;  %v3094_v23 = vld [vmem:[%s3024_s30 + $0x68] sm:$0xff]  ;;  %v4277_v24 = vand.u32 4294901760, %v3058_v14  ;;  %v4273_v28 = vand.u32 4294901760, %v3076_v19  ;;  %v4272_v29 = vand.u32 4294901760, %v3079_v20  ;;  %v3106_v30 = vld [vmem:[%s3024_s30 + $0x80] sm:$0xff] }
  0x63   : > { %4417 = vst [vmem:[#allocation11_spill] sm:$0xff] %v3070_v17  ;;  %v3091_v22 = vpack.c.bf16 %v4280_v13, %v4285_v12  ;;  %2250 = vmatprep.subr.bf16.mxu1 %v3070_v17  ;;  %v4274_v27 = vand.u32 4294901760, %v3073_v18  ;;  %v4271_v32 = vand.u32 4294901760, %v3094_v23  ;;  %v4270_v33 = vand.u32 4294901760, %v3106_v30  ;;  %v3131_v36 = vld [vmem:[%s3024_s30 + $0x70] sm:$0xff]  ;;  %v3140_v38 = vld [vmem:[%s3024_s30 + $0x88] sm:$0xff] }
  0x64   : > { %4418 = vst [vmem:[#allocation12_spill] sm:$0xff] %v3085_v21  ;;  %2443 = vmatpush3.bf16.xpose.msra.mxu0 %v3085_v21  ;;  %v3113_v31 = vpack.c.bf16 %v4276_v25, %v4277_v24  ;;  %v3128_v35 = vpack.c.bf16 %v4272_v29, %v4273_v28  ;;  %v3143_v39 = vld [vmem:[%s3024_s30 + $0x60] sm:$0xff]  ;;  %v3146_v40 = vld [vmem:[%s3024_s30 + $0x78] sm:$0xff]  ;;  %v3152_v42 = vld [vmem:[%s3024_s30 + $0xb0] sm:$0xff]  ;;  %v4265_v43 = vand.u32 4294901760, %v3131_v36  ;;  %v4262_v44 = vand.u32 4294901760, %v3140_v38 }
  0x65   : > { %4419 = vst [vmem:[#allocation13_spill] sm:$0xff] %v3091_v22  ;;  %2252 = vmatpush1.bf16.xpose.msra.mxu1 %v3091_v22  ;;  %2444 = vmatprep.subr.bf16.mxu0 %v4278_v0  ;;  %v3122_v34 = vpack.c.bf16 %v4274_v27, %v4275_v26  ;;  %v3137_v37 = vpack.c.bf16 %v4270_v33, %v4271_v32  ;;  %v3149_v41 = vld [vmem:[%s3024_s30 + $0x98] sm:$0xff]  ;;  %v4261_v45 = vand.u32 4294901760, %v3143_v39  ;;  %v4260_v46 = vand.u32 4294901760, %v3146_v40  ;;  %v3177_v51 = vld [vmem:[%s3024_s30 + $0xa0] sm:$0xff]  ;;  %v3189_v54 = vld [vmem:[%s3024_s30 + $0x90] sm:$0xff] }
  0x66   : > { %4420 = vst [vmem:[#allocation14_spill] sm:$0xff] %v3113_v31  ;;  %2254 = vmatprep.subr.bf16.mxu1 %v3113_v31  ;;  %4422 = vst [vmem:[#allocation16_spill] sm:$0xff] %v3128_v35  ;;  %v4259_v47 = vand.u32 4294901760, %v3149_v41  ;;  %v4258_v48 = vand.u32 4294901760, %v3152_v42  ;;  %v3168_v49 = vpack.c.bf16 %v4262_v44, %v4265_v43  ;;  %v3186_v53 = vld [vmem:[%s3024_s30 + $0xb8] sm:$0xff]  ;;  %v3192_v55 = vld [vmem:[%s3024_s30 + $0xa8] sm:$0xff]  ;;  %v3314_v11 = vsub.f32 %v3040_v4, %v1161_v8 }
  0x67   : > { %4421 = vst [vmem:[#allocation15_spill] sm:$0xff] %v3122_v34  ;;  %4423 = vst [vmem:[#allocation17_spill] sm:$0xff] %v3137_v37  ;;  %v3174_v50 = vpack.c.bf16 %v4260_v46, %v4261_v45  ;;  %v3195_v56 = vld [vmem:[%s3024_s30 + $0xc8] sm:$0xff]  ;;  %v3198_v57 = vld [vmem:[%s3024_s30 + $0xe0] sm:$0xff]  ;;  %v4264_v58 = vand.u32 4294901760, %v3177_v51  ;;  %v4263_v59 = vand.u32 4294901760, %v3186_v53 }
  0x68   : > { %4424 = vst [vmem:[#allocation18_spill] sm:$0xff] %v3168_v49  ;;  %v3183_v52 = vpack.c.bf16 %v4258_v48, %v4259_v47  ;;  %v4267_v60 = vand.u32 4294901760, %v3189_v54  ;;  %v4266_v61 = vand.u32 4294901760, %v3192_v55  ;;  %v4269_v62 = vand.u32 4294901760, %v3195_v56  ;;  %v3223_v47 = vld [vmem:[%s3024_s30 + $0xd0] sm:$0xff]  ;;  %v3226_v46 = vld [vmem:[%s3024_s30 + $0xe8] sm:$0xff] }
  0x69   : > { %4425 = vst [vmem:[#allocation19_spill] sm:$0xff] %v3174_v50  ;;  %v4268_v63 = vand.u32 4294901760, %v3198_v57  ;;  %v3214_v1 = vpack.c.bf16 %v4263_v59, %v4264_v58  ;;  %v3235_v44 = vld [vmem:[%s3024_s30 + $0xc0] sm:$0xff]  ;;  %v3238_v59 = vld [vmem:[%s3024_s30 + $0xd8] sm:$0xff]  ;;  %v289_v58 = vld [vmem:[#allocation2 + $0x8] sm:$0xff]  ;;  %v4436_v4 = vand.u32 4294901760, %v3049_v9 }
  0x6a   : > { %4426 = vst [vmem:[#allocation20_spill] sm:$0xff] %v3183_v52  ;;  %v3220_v48 = vpack.c.bf16 %v4266_v61, %v4267_v60  ;;  %v3241_v43 = vld [vmem:[%s3024_s30 + $0xf8] sm:$0xff]  ;;  %v3244_v61 = vld [vmem:[%s3024_s30 + $0x110] sm:$0xff]  ;;  %v4282_v60 = vand.u32 4294901760, %v3223_v47  ;;  %v4283_v33 = vand.u32 4294901760, %v3238_v59  ;;  %v3252_v32 = vand.u32 4294901760, %v289_v58 }
  0x6b   : > { %4427 = vst [vmem:[#allocation21_spill] sm:$0xff] %v3214_v1  ;;  %v3232_v45 = vpack.c.bf16 %v4268_v63, %v4269_v62  ;;  %v4281_v63 = vand.u32 4294901760, %v3226_v46  ;;  %v4284_v62 = vand.u32 4294901760, %v3235_v44  ;;  %v4287_v29 = vand.u32 4294901760, %v3241_v43  ;;  %v3274_v24 = vld [vmem:[%s3024_s30 + $0x100] sm:$0xff]  ;;  %v3284_v13 = vld [vmem:[%s3024_s30 + $0x118] sm:$0xff] }
  0x6c   : > { %2446 = vmatpush3.bf16.xpose.msra.mxu0 %v3122_v34  ;;  %4428 = vst [vmem:[#allocation22_spill] sm:$0xff] %v3220_v48  ;;  %4430 = vst [vmem:[#allocation24_spill] sm:$0xff] %v3252_v32  ;;  %v4286_v28 = vand.u32 4294901760, %v3244_v61  ;;  %v3259_v27 = vsub.f32 %v289_v58, %v3252_v32  ;;  %v3301_v12 = vld [vmem:[%s3024_s30 + $0x140] sm:$0xff]  ;;  %v3330_v8 = vsub.f32 %v3049_v9, %v4436_v4  ;;  %v4440_v4 = vand.u32 4294901760, %v3061_v15  ;;  %v3537_v21 = vld [vmem:[%s3024_s30 + $0x178] sm:$0xff] }
  0x6d   : > { %2256 = vmatpush1.bf16.xpose.msra.mxu1 %v3128_v35  ;;  %2447 = vmatprep.subr.bf16.mxu0 %v4278_v0  ;;  %4429 = vst [vmem:[#allocation23_spill] sm:$0xff] %v3232_v45  ;;  %v3265_v26 = vpack.c.bf16 %v4281_v63, %v4282_v60  ;;  %v3271_v25 = vpack.c.bf16 %v4283_v33, %v4284_v62  ;;  %v3287_v63 = vld [vmem:[%s3024_s30 + $0xf0] sm:$0xff]  ;;  %v3290_v60 = vld [vmem:[%s3024_s30 + $0x108] sm:$0xff]  ;;  %s238_s21 = scalar_select %p237_p5, %s2824_s15, 1 }
  0x6e   : > { %2258 = vmatprep.subr.bf16.mxu1 %v3137_v37  ;;  %4431 = vst [vmem:[#allocation25_spill] sm:$0xff] %v3259_v27  ;;  %v3281_v58 = vpack.c.bf16 %v4286_v28, %v4287_v29  ;;  %v3295_v33 = vsub.f32 %v3034_v2, %v298_v5  ;;  %v3298_v62 = vld [vmem:[%s3024_s30 + $0x128] sm:$0xff]  ;;  %v3309_v29 = vsub.f32 %v3037_v3, %v302_v6  ;;  %v4435_v2 = vand.u32 4294901760, %v3045_v7  ;;  %v3457_v37 = vld [vmem:[%s3024_s30 + $0x158] sm:$0xff]  ;;  %v3460_v35 = vld [vmem:[%s3024_s30 + $0x170] sm:$0xff]  ;;  %s1931_s23 = sshll.u32 %s3020_s9, 3 }
  0x6f   : > { %4432 = vst [vmem:[#allocation26_spill] sm:$0xff] %v3265_v26  ;;  %4433 = vst [vmem:[#allocation27_spill] sm:$0xff] %v3271_v25  ;;  %v4439_v6 = vand.u32 4294901760, %v3058_v14  ;;  %v4442_v3 = vand.u32 4294901760, %v3073_v18  ;;  %s239_s18 = scalar_lea.vmem %s4248_s2, %s238_s21  ;;  %s1934_s22 = sshll.u32 %s2824_s15, 7 }
  0x70   : > { %4434 = vst [vmem:[#allocation28_spill] sm:$0xff] %v3281_v58  ;;  %v3319_v5 = vsub.f32 %v3045_v7, %v4435_v2  ;;  %v4437_v7 = vand.u32 4294901760, %v3052_v10  ;;  %s235_s5 = scalar_lea.vmem [#allocation7], %s1931_s23  ;;  %s4197_s19 = scalar_lea.hbm %s4249_s3, %s1934_s22 }
  0x71   : > { %v3344_v9 = vsub.f32 %v3058_v14, %v4439_v6  ;;  %v4443_v14 = vand.u32 4294901760, %v3076_v19  ;;  %s1818_s20 = sshll.u32 %s235_s5, 4  ;;  %s1803_s27 = scalar_lea.sflag [#allocation4], %s3020_s9  ;;  %s4199_s20 = int_to_ptr.vmem [resolvable:$true] %s1818_s20 }
  0x72   : > { %v3335_v2 = vsub.f32 %v3052_v10, %v4437_v7  ;;  %v3349_v10 = vsub.f32 %v3061_v15, %v4440_v4  ;;  %v4441_v7 = vand.u32 4294901760, %v3064_v16  ;;  %v4444_v15 = vand.u32 4294901760, %v3079_v20  ;;  %s2746_s7 = scalar_lea.vmem %s4199_s20, 128  ;;  %p4701_p11 = scmp.ne.s32.totalorder %s4406_s24, 0 }
  0x73   : > { %v3364_v6 = vsub.f32 %v3076_v19, %v4443_v14  ;;  %v4448_v14 = vand.u32 4294901760, %v3140_v38  ;;  %p2747_p10 = scmp.ne.s32.totalorder %s4199_s20, %s2746_s7  ;;  %s2841_s15 = smov [#allocation7]  }
  0x74   : > { %2449 = vmatpush3.bf16.xpose.msra.mxu0 %v3168_v49  ;;  %v3369_v4 = vsub.f32 %v3079_v20, %v4444_v15  ;;  %v4449_v15 = vand.u32 4294901760, %v3274_v24  ;;  %s2750_s8 = sshll.u32 %s2841_s15, 4  ;;  %s2751_s8 = int_to_ptr.vmem [resolvable:$false] %s2750_s8 }
  0x75   : > { %2260 = vmatpush1.bf16.xpose.msra.mxu1 %v3174_v50  ;;  %2450 = vmatprep.subr.bf16.mxu0 %v4278_v0  ;;  %v3389_v20 = vsub.f32 %v3140_v38, %v4448_v14  ;;  %v4455_v38 = vand.u32 4294901760, %v3143_v39  ;;  %v4461_v50 = vand.u32 4294901760, %v3152_v42  ;;  %p2748_p1 = pnand %p2747_p10, %p4701_p11  ;;  %s2752_s10 = scalar_lea.vmem %s2751_s8, 256 }
  0x76   : > { %2262 = vmatprep.subr.bf16.mxu1 %v3183_v52  ;;  %v3431_v52 = vld [vmem:[%s3024_s30 + $0x120] sm:$0xff]  ;;  %p2753_p9 = scmp.lt.s32.totalorder %s4199_s20, %s2751_s8  ;;  %p2754_p3 = scmp.lt.s32.totalorder %s2752_s10, %s2746_s7 }
  0x77   : > { %v3412_v14 = vsub.f32 %v3143_v39, %v4455_v38  ;;  %v3434_v39 = vld [vmem:[%s3024_s30 + $0x138] sm:$0xff]  ;;  %v4490_v31 = vand.u32 4294901760, %v3431_v52  ;;  %p2749_p0 = pneg %p2748_p1 }
  0x78   : > { %v290_v38 = vld [vmem:[#allocation2 + $0x10] sm:$0xff]  ;;  %v4491_v22 = vand.u32 4294901760, %v3434_v39  ;;  %p2755_p7 = por %p2754_p3, %p2753_p9 }
  0x7a   : > { %p2756_p13 = pnand %p2755_p7, %p2749_p0 }
  0x7c   : > { %2452 = vmatpush3.bf16.xpose.msra.mxu0 %v3214_v1 }
  0x7d   : > { %2264 = vmatpush1.bf16.xpose.msra.mxu1 %v3220_v48  ;;  %2453 = vmatprep.subr.bf16.mxu0 %v4278_v0  ;;  %v4291_v0 = vand.u32 4294901760, %v3259_v27 }
  0x7e   : > { %2266 = vmatprep.subr.bf16.mxu1 %v3232_v45  ;;  %v4438_v45 = vmov 0.0|0.0  }
  0x7f   : > { %v397_v28 = vsub.f32 %v3259_v27, %v4291_v0  ;;  %v3354_v0 = vsub.f32 %v3064_v16, %v4441_v7  ;;  %v4445_v16 = vand.u32 4294901760, %v3094_v23 }
  0x81   : > { %v398_v48 = vand.u32 4294901760, %v397_v28  ;;  %v3374_v7 = vsub.f32 %v3094_v23, %v4445_v16  ;;  %v4450_v23 = vand.u32 4294901760, %v3284_v13 }
  0x83   : > { %399 = vmatprep.mubr.f32.mxu1 %v398_v48  ;;  %v3395_v16 = vpack.c.bf16 %v4450_v23, %v4449_v15  ;;  %v4457_v23 = vand.u32 4294901760, %v3149_v41 }
  0x84   : > { %2455 = vmatpush3.bf16.xpose.msra.mxu0 %v3265_v26 }
  0x85   : > { %2268 = vmatpush1.bf16.xpose.msra.mxu1 %v3271_v25  ;;  %2456 = vmatprep.subr.bf16.mxu0 %v4438_v45  ;;  %4451 = vst [vmem:[#allocation29_spill] sm:$0xff] %v3395_v16  ;;  %v4456_v25 = vand.u32 4294901760, %v3146_v40  ;;  %v3422_v26 = vsub.f32 %v3149_v41, %v4457_v23  ;;  %v4464_v23 = vand.u32 4294901760, %v3186_v53 }
  0x86   : > { %2270 = vmatprep.subr.bf16.mxu1 %v3281_v58  ;;  %v3359_v58 = vsub.f32 %v3073_v18, %v4442_v3  ;;  %v4446_v18 = vand.u32 4294901760, %v3106_v30  ;;  %v4447_v3 = vand.u32 4294901760, %v3131_v36 }
  0x87   : > { %v3417_v15 = vsub.f32 %v3146_v40, %v4456_v25  ;;  %v3439_v25 = vsub.f32 %v3152_v42, %v4461_v50  ;;  %v4462_v40 = vand.u32 4294901760, %v3177_v51  ;;  %v4468_v42 = vand.u32 4294901760, %v3192_v55 }
  0x88   : > { %v3379_v48 = vsub.f32 %v3106_v30, %v4446_v18  ;;  %v3384_v19 = vsub.f32 %v3131_v36, %v4447_v3  ;;  %v4452_v30 = vand.u32 4294901760, %v3287_v63  ;;  %v4453_v18 = vand.u32 4294901760, %v3290_v60  ;;  %v3404_v36 = vld [vmem:[%s3024_s30 + $0x130] sm:$0xff]  ;;  %v3407_v3 = vld [vmem:[%s3024_s30 + $0x148] sm:$0xff] }
  0x89   : > { %v3444_v41 = vsub.f32 %v3177_v51, %v4462_v40  ;;  %v3465_v50 = vsub.f32 %v3192_v55, %v4468_v42  ;;  %v4470_v51 = vand.u32 4294901760, %v3195_v56  ;;  %v4475_v55 = vand.u32 4294901760, %v3223_v47 }
  0x8a   : > { %v3401_v28 = vpack.c.bf16 %v4453_v18, %v4452_v30  ;;  %v4458_v30 = vand.u32 4294901760, %v3298_v62  ;;  %v4459_v18 = vand.u32 4294901760, %v3301_v12 }
  0x8b   : > { %4463 = vst [vmem:[#allocation32_spill] sm:$0xff] %v3444_v41  ;;  %4469 = vst [vmem:[#allocation35_spill] sm:$0xff] %v3465_v50  ;;  %v3470_v40 = vsub.f32 %v3195_v56, %v4470_v51  ;;  %v3483_v56 = vand.u32 4294901760, %v290_v38  ;;  %v3494_v42 = vsub.f32 %v3223_v47, %v4475_v55  ;;  %v4484_v47 = vand.u32 4294901760, %v3241_v43 }
  0x8c   : > { %4454 = vst [vmem:[#allocation30_spill] sm:$0xff] %v3401_v28  ;;  %v3428_v1 = vpack.c.bf16 %v4459_v18, %v4458_v30  ;;  %v3449_v30 = vsub.f32 %v3186_v53, %v4464_v23  ;;  %v4466_v18 = vand.u32 4294901760, %v3189_v54  ;;  %v1197_v53 = vand.u32 4294901760, %v3404_v36  ;;  %2458 = vmatpush3.bf16.xpose.msra.mxu0 %v3395_v16 }
  0x8d   : > { %4471 = vst [vmem:[#allocation36_spill] sm:$0xff] %v3470_v40  ;;  %2272 = vmatpush1.bf16.xpose.msra.mxu1 %v3401_v28  ;;  %4474 = vst [vmem:[#allocation38_spill] sm:$0xff] %v3483_v56  ;;  %2459 = vmatprep.subr.bf16.mxu0 %v4438_v45  ;;  %v4477_v28 = vand.u32 4294901760, %v3226_v46  ;;  %v4482_v23 = vand.u32 4294901760, %v3238_v59  ;;  %v3516_v55 = vsub.f32 %v3241_v43, %v4484_v47  ;;  %v3540_v43 = vld [vmem:[%s3024_s30 + $0x150] sm:$0xff] }
  0x8e   : > { %4460 = vst [vmem:[#allocation31_spill] sm:$0xff] %v3428_v1  ;;  %4465 = vst [vmem:[#allocation33_spill] sm:$0xff] %v3449_v30  ;;  %v3454_v49 = vsub.f32 %v3189_v54, %v4466_v18  ;;  %v288_v54 = vld [vmem:[#allocation2] sm:$0xff]  ;;  %v4472_v18 = vand.u32 4294901760, %v3198_v57  ;;  %2274 = vmatprep.subr.bf16.mxu1 %v3428_v1  ;;  %v4479_v1 = vand.u32 4294901760, %v3235_v44  ;;  %v3543_v47 = vsub.f32 %v290_v38, %v3483_v56 }
  0x8f   : > { %4476 = vst [vmem:[#allocation39_spill] sm:$0xff] %v3494_v42  ;;  %v3499_v16 = vsub.f32 %v3226_v46, %v4477_v28  ;;  %v3506_v51 = vand.u32 4294901760, %v288_v54  ;;  %4485 = vst [vmem:[#allocation44_spill] sm:$0xff] %v3516_v55  ;;  %v4486_v46 = vand.u32 4294901760, %v3244_v61  ;;  %v4499_v38 = vand.u32 4294901760, %v3295_v33 }
  0x90   : > { %4467 = vst [vmem:[#allocation34_spill] sm:$0xff] %v3454_v49  ;;  %v3477_v34 = vsub.f32 %v3198_v57, %v4472_v18  ;;  %v3504_v57 = vsub.f32 %v3235_v44, %v4479_v1  ;;  %v3511_v18 = vsub.f32 %v3238_v59, %v4482_v23  ;;  %v4488_v1 = vand.u32 4294901760, %v3407_v3  ;;  %v3534_v23 = vld [vmem:[%s3024_s30 + $0x160] sm:$0xff]  ;;  %4493 = vst [vmem:[#allocation48_spill] sm:$0xff] %v3543_v47 }
  0x91   : > { %4478 = vst [vmem:[#allocation40_spill] sm:$0xff] %v3499_v16  ;;  %4481 = vst [vmem:[#allocation42_spill] sm:$0xff] %v3506_v51  ;;  %v3521_v28 = vsub.f32 %v3244_v61, %v4486_v46  ;;  %v3531_v59 = vpack.c.bf16 %v4491_v22, %v4490_v31  ;;  %v4496_v22 = vand.u32 4294901760, %v3457_v37  ;;  %v4497_v31 = vand.u32 4294901760, %v3460_v35 }
  0x92   : > { %4473 = vst [vmem:[#allocation37_spill] sm:$0xff] %v3477_v34  ;;  %4480 = vst [vmem:[#allocation41_spill] sm:$0xff] %v3504_v57  ;;  %v3525_v44 = vpack.c.bf16 %v4488_v1, %v1197_v53  ;;  %v4494_v1 = vand.u32 4294901760, %v3274_v24  ;;  %v413_v56 = vsub.f32 %v3295_v33, %v4499_v38  ;;  %v4500_v61 = vand.u32 4294901760, %v3309_v29 }
  0x93   : > { %4483 = vst [vmem:[#allocation43_spill] sm:$0xff] %v3511_v18  ;;  %4487 = vst [vmem:[#allocation45_spill] sm:$0xff] %v3521_v28  ;;  %v3556_v27 = vpack.c.bf16 %v4497_v31, %v4496_v22  ;;  %v3559_v28 = vld [vmem:[%s3024_s30 + $0x168] sm:$0xff]  ;;  %v4501_v55 = vand.u32 4294901760, %v3284_v13 }
  0x94   : > { %4489 = vst [vmem:[#allocation46_spill] sm:$0xff] %v3525_v44  ;;  %4492 = vst [vmem:[#allocation47_spill] sm:$0xff] %v3531_v59  ;;  %v3550_v17 = vsub.f32 %v3274_v24, %v4494_v1  ;;  %v425_v46 = vsub.f32 %v3309_v29, %v4500_v61  ;;  %v3573_v1 = vsub.f32 %v288_v54, %v3506_v51  ;;  %2461 = vmatpush3.bf16.xpose.msra.mxu0 %v3525_v44 }
  0x95   : > { %4498 = vst [vmem:[#allocation50_spill] sm:$0xff] %v3556_v27  ;;  %v3570_v24 = vsub.f32 %v3284_v13, %v4501_v55  ;;  %2276 = vmatpush1.bf16.xpose.msra.mxu1 %v3531_v59  ;;  %v4504_v55 = vand.u32 4294901760, %v3314_v11  ;;  %2462 = vmatprep.subr.bf16.mxu0 %v4438_v45  ;;  %v414_v57 = vand.u32 4294901760, %v413_v56  ;;  %v4506_v54 = vand.u32 4294901760, %v3290_v60 }
  0x96   : > { %4495 = vst [vmem:[#allocation49_spill] sm:$0xff] %v3550_v17  ;;  %4502 = vst [vmem:[#allocation51_spill] sm:$0xff] %v3573_v1  ;;  %v4503_v17 = vand.u32 4294901760, %v3287_v63  ;;  %2278 = vmatprep.subr.bf16.mxu1 %v3556_v27  ;;  %v426_v61 = vand.u32 4294901760, %v425_v46  ;;  %v4507_v59 = vand.u32 4294901760, %v3330_v8  ;;  %v4508_v44 = vand.u32 4294901760, %v3335_v2 }
  0x97   : > { %v1255_v31 = vsub.f32 %v3314_v11, %v4504_v55  ;;  %v3602_v22 = vsub.f32 %v3290_v60, %v4506_v54  ;;  %v4509_v46 = vand.u32 4294901760, %v3298_v62  ;;  %v4511_v13 = vand.u32 4294901760, %v3301_v12 }
  0x98   : > { %v3580_v38 = vsub.f32 %v3287_v63, %v4503_v17  ;;  %v4505_v17 = vand.u32 4294901760, %v3319_v5  ;;  %v431_v56 = vsub.f32 %v3335_v2, %v4508_v44  ;;  %v3622_v54 = vsub.f32 %v3404_v36, %v1197_v53 }
  0x99   : > { %v3614_v18 = vsub.f32 %v3298_v62, %v4509_v46  ;;  %v3619_v60 = vsub.f32 %v3301_v12, %v4511_v13  ;;  %v4514_v55 = vand.u32 4294901760, %v3534_v23  ;;  %v4517_v44 = vand.u32 4294901760, %v3540_v43 }
  0x9a   : > { %v1262_v63 = vsub.f32 %v3319_v5, %v4505_v17  ;;  %v419_v17 = vsub.f32 %v3330_v8, %v4507_v59  ;;  %4513 = vst [vmem:[#allocation54_spill] sm:$0xff] %v3622_v54  ;;  %v4515_v59 = vand.u32 4294901760, %v3537_v21  ;;  %v4518_v51 = vand.u32 4294901760, %v3559_v28 }
  0x9b   : > { %4510 = vst [vmem:[#allocation52_spill] sm:$0xff] %v3614_v18  ;;  %4512 = vst [vmem:[#allocation53_spill] sm:$0xff] %v3619_v60  ;;  %v4520_v46 = vand.u32 4294901760, %v3543_v47  ;;  %v1256_v13 = vand.u32 4294901760, %v1255_v31  ;;  %v4521_v36 = vand.u32 4294901760, %v3407_v3  ;;  %v2281_v54 = vpack.c.bf16 %v426_v61, %v414_v57 }
  0x9c   : > { %v3628_v27 = vpack.c.bf16 %v4515_v59, %v4514_v55  ;;  %v3634_v62 = vpack.c.bf16 %v4518_v51, %v4517_v44  ;;  %v1263_v60 = vand.u32 4294901760, %v1262_v63  ;;  %v4522_v55 = vand.u32 4294901760, %v3344_v9 }
  0x9d   : > { %v1244_v12 = vsub.f32 %v3543_v47, %v4520_v46  ;;  %v3642_v53 = vsub.f32 %v3407_v3, %v4521_v36  ;;  %v4523_v18 = vand.u32 4294901760, %v3349_v10  ;;  %v4524_v44 = vand.u32 4294901760, %v3431_v52 }
  0x9e   : > { %4516 = vst [vmem:[#allocation55_spill] sm:$0xff] %v3628_v27  ;;  %4519 = vst [vmem:[#allocation56_spill] sm:$0xff] %v3634_v62  ;;  %v437_v59 = vsub.f32 %v3344_v9, %v4522_v55  ;;  %v4526_v31 = vand.u32 4294901760, %v3573_v1  ;;  %v420_v3 = vand.u32 4294901760, %v419_v17  ;;  %v432_v36 = vand.u32 4294901760, %v431_v56  ;;  %2464 = vmatpush3.bf16.xpose.msra.mxu0 %v3628_v27  ;;  %2280 = vmatpush1.bf16.xpose.msra.mxu1 %v3634_v62 }
  0x9f   : > { %v449_v51 = vsub.f32 %v3349_v10, %v4523_v18  ;;  %v3653_v46 = vsub.f32 %v3431_v52, %v4524_v44  ;;  %v1245_v52 = vand.u32 4294901760, %v1244_v12  ;;  %v2466_v18 = vpack.c.bf16 %v1263_v60, %v1256_v13  ;;  %2465 = vmatprep.subr.bf16.mxu0 %v4438_v45  ;;  %2282 = vmatprep.subr.bf16.mxu1 %v2281_v54 }
  0xa0   : > { %v403_v63 = vsub.f32 %v3573_v1, %v4526_v31  ;;  %v4354_v44 = vand.u32 4294901760, %v3374_v7  ;;  %v438_v17 = vand.u32 4294901760, %v437_v59  ;;  %v2283_v57 = vpack.c.bf16 %v432_v36, %v420_v3 }
  0xa1   : > { %4525 = vst [vmem:[#allocation57_spill] sm:$0xff] %v3653_v46  ;;  %v450_v56 = vand.u32 4294901760, %v449_v51  ;;  %v4527_v60 = vand.u32 4294901760, %v3354_v0  ;;  %v4528_v31 = vand.u32 4294901760, %v3359_v58  ;;  %v4529_v59 = vand.u32 4294901760, %v3364_v6 }
  0xa2   : > { %v404_v47 = vand.u32 4294901760, %v403_v63  ;;  %v4530_v55 = vand.u32 4294901760, %v3369_v4  ;;  %v461_v3 = vsub.f32 %v3374_v7, %v4354_v44  ;;  %v4531_v36 = vand.u32 4294901760, %v3379_v48 }
  0xa3   : > { %v1269_v13 = vsub.f32 %v3354_v0, %v4527_v60  ;;  %v1276_v54 = vsub.f32 %v3359_v58, %v4528_v31  ;;  %v443_v51 = vsub.f32 %v3364_v6, %v4529_v59  ;;  %v4532_v27 = vand.u32 4294901760, %v3434_v39 }
  0xa4   : > { %v455_v63 = vsub.f32 %v3369_v4, %v4530_v55  ;;  %v473_v60 = vsub.f32 %v3379_v48, %v4531_v36  ;;  %v2285_v61 = vpack.c.bf16 %v450_v56, %v438_v17  ;;  %v4534_v55 = vand.u32 4294901760, %v3384_v19 }
  0xa5   : > { %v3694_v59 = vsub.f32 %v3434_v39, %v4532_v27  ;;  %v4535_v44 = vand.u32 4294901760, %v3389_v20  ;;  %v4536_v36 = vand.u32 4294901760, %v3457_v37  ;;  %v4538_v31 = vand.u32 4294901760, %v3460_v35  ;;  %2072 = vmatmul.mubr.f32.vlgmr.msra.gmra.mrb[0].mxu0 %v1245_v52  ;;  %405 = vmatmul.mubr.f32.vlgmr.msra.gmra.mrb[0].mxu1 %v404_v47 }
  0xa6   : > { %v1283_v62 = vsub.f32 %v3384_v19, %v4534_v55  ;;  %v4540_v27 = vand.u32 4294901760, %v3412_v14  ;;  %v4541_v17 = vand.u32 4294901760, %v3417_v15  ;;  %v1277_v55 = vand.u32 4294901760, %v1276_v54  ;;  %2467 = vmatpush3.bf16.xpose.msra.mxu0 %v2466_v18  ;;  %2284 = vmatpush1.bf16.xpose.msra.mxu1 %v2283_v57 }
  0xa7   : > { %4533 = vst [vmem:[#allocation58_spill] sm:$0xff] %v3694_v59  ;;  %v1290_v1 = vsub.f32 %v3389_v20, %v4535_v44  ;;  %v3705_v12 = vsub.f32 %v3457_v37, %v4536_v36  ;;  %v3710_v46 = vsub.f32 %v3460_v35, %v4538_v31  ;;  %v1270_v44 = vand.u32 4294901760, %v1269_v13  ;;  %2468 = vmatprep.subr.bf16.mxu0 %v4438_v45 }
  0xa8   : > { %v467_v39 = vsub.f32 %v3412_v14, %v4540_v27  ;;  %v479_v56 = vsub.f32 %v3417_v15, %v4541_v17  ;;  %v444_v59 = vand.u32 4294901760, %v443_v51  ;;  %v456_v37 = vand.u32 4294901760, %v455_v63  ;;  %2286 = vmatprep.subr.bf16.mxu1 %v2285_v61  ;;  %635 = vmatprep.mubr.f32.mxu1 %v3252_v32 }
  0xa9   : > { %4537 = vst [vmem:[#allocation59_spill] sm:$0xff] %v3705_v12  ;;  %4539 = vst [vmem:[#allocation60_spill] sm:$0xff] %v3710_v46  ;;  %v462_v36 = vand.u32 4294901760, %v461_v3  ;;  %v474_v12 = vand.u32 4294901760, %v473_v60  ;;  %v4542_v35 = vand.u32 4294901760, %v3422_v26  ;;  %v4543_v27 = vand.u32 4294901760, %v3439_v25 }
  0xaa   : > { %v4544_v17 = vand.u32 4294901760, %v3534_v23  ;;  %v1284_v52 = vand.u32 4294901760, %v1283_v62  ;;  %v1291_v57 = vand.u32 4294901760, %v1290_v1  ;;  %v4362_v18 = vand.u32 4294901760, %v3444_v41 }
  0xab   : > { %v485_v31 = vsub.f32 %v3422_v26, %v4542_v35  ;;  %v497_v46 = vsub.f32 %v3439_v25, %v4543_v27  ;;  %v4545_v13 = vand.u32 4294901760, %v3537_v21  ;;  %v468_v51 = vand.u32 4294901760, %v467_v39 }
  0xac   : > { %v3727_v47 = vsub.f32 %v3534_v23, %v4544_v17  ;;  %v480_v63 = vand.u32 4294901760, %v479_v56  ;;  %v4546_v60 = vmov 0.0   ;;  %v4547_v23 = vand.u32 4294901760, %v3540_v43 }
  0xad   : > { %v3734_v54 = vsub.f32 %v3537_v21, %v4545_v13  ;;  %2106 = vmatprep.mubr.msk.f32.mxu0 %vm2839_vm0, %v4546_v60  ;;  %v4548_v62 = vand.u32 4294901760, %v3559_v28  ;;  %v2469_v21 = vpack.c.bf16 %v1277_v55, %v1270_v44  ;;  %v4361_v39 = vand.u32 4294901760, %v3454_v49 }
  0xae   : > { %v3743_v1 = vsub.f32 %v3540_v43, %v4547_v23  ;;  %v2287_v56 = vpack.c.bf16 %v456_v37, %v444_v59  ;;  %v2289_v35 = vpack.c.bf16 %v474_v12, %v462_v36  ;;  %v486_v27 = vand.u32 4294901760, %v485_v31  ;;  %v4555_v37 = vld [vmem:[#allocation52_spill] sm:$0xff]  ;;  %v4557_v23 = vld [vmem:[#allocation54_spill] sm:$0xff]  ;;  %v4558_v43 = vld [vmem:[#allocation57_spill] sm:$0xff] }
  0xaf   : > { %v3748_v61 = vsub.f32 %v3559_v28, %v4548_v62  ;;  %v498_v17 = vand.u32 4294901760, %v497_v46  ;;  %v2472_v13 = vpack.c.bf16 %v1291_v57, %v1284_v52  ;;  %v1297_v3 = vsub.f32 %v3444_v41, %v4362_v18  ;;  %2470 = vmatpush3.bf16.xpose.msra.mxu0 %v2469_v21  ;;  %v4550_v18 = vld [vmem:[#allocation41_spill] sm:$0xff]  ;;  %v4552_v21 = vld [vmem:[#allocation44_spill] sm:$0xff] }
  0xb0   : > { %v2291_v28 = vpack.c.bf16 %v480_v63, %v468_v51  ;;  %v4549_v44 = vand.u32 4294901760, %v3449_v30  ;;  %v4363_v12 = vand.u32 4294901760, %v3465_v50  ;;  %v491_v59 = vsub.f32 %v3454_v49, %v4361_v39  ;;  %2288 = vmatpush1.bf16.xpose.msra.mxu1 %v2287_v56  ;;  %2471 = vmatprep.subr.bf16.mxu0 %v4438_v45  ;;  %v4553_v51 = vld [vmem:[#allocation45_spill] sm:$0xff]  ;;  %v4559_v39 = vld [vmem:[#allocation58_spill] sm:$0xff]  ;;  %v4560_v57 = vld [vmem:[#allocation59_spill] sm:$0xff] }
  0xb1   : > { %v2293_v52 = vpack.c.bf16 %v498_v17, %v486_v27  ;;  %2290 = vmatprep.subr.bf16.mxu1 %v2289_v35  ;;  %v4554_v56 = vld [vmem:[#allocation49_spill] sm:$0xff]  ;;  %v4561_v63 = vld [vmem:[#allocation60_spill] sm:$0xff]  ;;  %v4562_v31 = vand.u32 4294901760, %v3470_v40  ;;  %v4563_v36 = vand.u32 4294901760, %v3477_v34  ;;  %v4378_v62 = vand.u32 4294901760, %v3494_v42 }
  0xb2   : > { %v1304_v55 = vsub.f32 %v3449_v30, %v4549_v44  ;;  %v503_v27 = vsub.f32 %v3465_v50, %v4363_v12  ;;  %v4551_v44 = vld [vmem:[#allocation43_spill] sm:$0xff]  ;;  %v4556_v17 = vld [vmem:[#allocation53_spill] sm:$0xff]  ;;  %v1298_v50 = vand.u32 4294901760, %v1297_v3  ;;  %v4379_v41 = vand.u32 4294901760, %v3499_v16 }
  0xb3   : > { %v509_v49 = vsub.f32 %v3470_v40, %v4562_v31  ;;  %v521_v12 = vsub.f32 %v3477_v34, %v4563_v36  ;;  %v492_v40 = vand.u32 4294901760, %v491_v59  ;;  %v4394_v36 = vand.u32 4294901760, %v4551_v44 }
  0xb4   : > { %v1305_v31 = vand.u32 4294901760, %v1304_v55  ;;  %v504_v30 = vand.u32 4294901760, %v503_v27  ;;  %v4391_v3 = vand.u32 4294901760, %v4552_v21  ;;  %v4389_v35 = vand.u32 4294901760, %v4553_v51 }
  0xb5   : > { %v510_v46 = vand.u32 4294901760, %v509_v49  ;;  %v522_v34 = vand.u32 4294901760, %v521_v12  ;;  %v1311_v32 = vsub.f32 %v3494_v42, %v4378_v62  ;;  %v527_v49 = vsub.f32 %v4551_v44, %v4394_v36 }
  0xb6   : > { %v2475_v59 = vpack.c.bf16 %v1305_v31, %v1298_v50  ;;  %v533_v27 = vsub.f32 %v4552_v21, %v4391_v3  ;;  %v545_v62 = vsub.f32 %v4553_v51, %v4389_v35  ;;  %v4384_v50 = vand.u32 4294901760, %v3570_v24 }
  0xb7   : > { %2473 = vmatpush3.bf16.xpose.msra.mxu0 %v2472_v13  ;;  %v1318_v13 = vsub.f32 %v3499_v16, %v4379_v41  ;;  %v2297_v12 = vpack.c.bf16 %v522_v34, %v510_v46  ;;  %v1312_v41 = vand.u32 4294901760, %v1311_v32  ;;  %v4385_v34 = vand.u32 4294901760, %v3580_v38 }
  0xb8   : > { %2292 = vmatpush1.bf16.xpose.msra.mxu1 %v2291_v28  ;;  %2474 = vmatprep.subr.bf16.mxu0 %v4438_v45  ;;  %v4564_v28 = vand.u32 4294901760, %v4550_v18  ;;  %v534_v46 = vand.u32 4294901760, %v533_v27  ;;  %v546_v31 = vand.u32 4294901760, %v545_v62  ;;  %v4388_v32 = vand.u32 4294901760, %v4555_v37 }
  0xb9   : > { %2294 = vmatprep.subr.bf16.mxu1 %v2293_v52  ;;  %v2295_v52 = vpack.c.bf16 %v504_v30, %v492_v40  ;;  %v1319_v42 = vand.u32 4294901760, %v1318_v13  ;;  %v528_v30 = vand.u32 4294901760, %v527_v49  ;;  %v4387_v40 = vand.u32 4294901760, %v3602_v22 }
  0xba   : > { %v515_v55 = vsub.f32 %v4550_v18, %v4564_v28  ;;  %v4386_v28 = vand.u32 4294901760, %v4554_v56  ;;  %v4390_v13 = vand.u32 4294901760, %v4556_v17  ;;  %v1332_v49 = vsub.f32 %v3570_v24, %v4384_v50 }
  0xbb   : > { %v551_v62 = vsub.f32 %v3602_v22, %v4387_v40  ;;  %v2301_v27 = vpack.c.bf16 %v546_v31, %v534_v46  ;;  %v4392_v50 = vand.u32 4294901760, %v3642_v53  ;;  %v4402_v31 = vand.u32 4294901760, %v4559_v39 }
  0xbc   : > { %v516_v16 = vand.u32 4294901760, %v515_v55  ;;  %v2478_v55 = vpack.c.bf16 %v1319_v42, %v1312_v41  ;;  %v557_v41 = vsub.f32 %v4555_v37, %v4388_v32 }
  0xbd   : > { %v552_v46 = vand.u32 4294901760, %v551_v62  ;;  %v575_v62 = vsub.f32 %v4559_v39, %v4402_v31  ;;  %v4610_v31 = vld [vmem:[#allocation18_spill] sm:$0xff] }
  0xbe   : > { %v558_v32 = vand.u32 4294901760, %v557_v41 }
  0xbf   : > { %2476 = vmatpush3.bf16.xpose.msra.mxu0 %v2475_v59  ;;  %v1325_v59 = vsub.f32 %v4554_v56, %v4386_v28  ;;  %v1333_v28 = vand.u32 4294901760, %v1332_v49 }
  0xc0   : > { %2296 = vmatpush1.bf16.xpose.msra.mxu1 %v2295_v52  ;;  %2477 = vmatprep.subr.bf16.mxu0 %v4438_v45  ;;  %v2299_v52 = vpack.c.bf16 %v528_v30, %v516_v16  ;;  %v569_v16 = vsub.f32 %v4556_v17, %v4390_v13  ;;  %v4393_v30 = vand.u32 4294901760, %v4557_v23  ;;  %v4396_v13 = vand.u32 4294901760, %v4561_v63 }
  0xc1   : > { %2298 = vmatprep.subr.bf16.mxu1 %v2297_v12  ;;  %v539_v12 = vsub.f32 %v3580_v38, %v4385_v34  ;;  %v1326_v42 = vand.u32 4294901760, %v1325_v59  ;;  %v4395_v34 = vand.u32 4294901760, %v4558_v43  ;;  %v4401_v59 = vand.u32 4294901760, %v4560_v57 }
  0xc2   : > { %v570_v35 = vand.u32 4294901760, %v569_v16  ;;  %v1339_v3 = vsub.f32 %v4557_v23, %v4393_v30  ;;  %v593_v16 = vsub.f32 %v4561_v63, %v4396_v13 }
  0xc3   : > { %v540_v40 = vand.u32 4294901760, %v539_v12  ;;  %v2481_v49 = vpack.c.bf16 %v1333_v28, %v1326_v42  ;;  %v581_v41 = vsub.f32 %v4560_v57, %v4401_v59  ;;  %v576_v28 = vand.u32 4294901760, %v575_v62  ;;  %v4609_v59 = vld [vmem:[#allocation17_spill] sm:$0xff] }
  0xc5   : > { %v2303_v12 = vpack.c.bf16 %v552_v46, %v540_v40  ;;  %v4399_v40 = vand.u32 4294901760, %v3734_v54  ;;  %v582_v42 = vand.u32 4294901760, %v581_v41  ;;  %v594_v46 = vand.u32 4294901760, %v593_v16 }
  0xc7   : > { %2479 = vmatpush3.bf16.xpose.msra.mxu0 %v2478_v55  ;;  %v1346_v55 = vsub.f32 %v3642_v53, %v4392_v50  ;;  %v1340_v50 = vand.u32 4294901760, %v1339_v3  ;;  %v2309_v62 = vpack.c.bf16 %v594_v46, %v582_v42  ;;  %v4566_v42 = vld [vmem:[#allocation38_spill] sm:$0xff]  ;;  %v4568_v46 = vpack.c.bf16 %v3319_v5, %v3314_v11 }
  0xc8   : > { %2300 = vmatpush1.bf16.xpose.msra.mxu1 %v2299_v52  ;;  %2480 = vmatprep.subr.bf16.mxu0 %v4438_v45  ;;  %v563_v52 = vsub.f32 %v4558_v43, %v4395_v34  ;;  %v4400_v34 = vand.u32 4294901760, %v3727_v47 }
  0xc9   : > { %2302 = vmatprep.subr.bf16.mxu1 %v2301_v27  ;;  %v2305_v27 = vpack.c.bf16 %v570_v35, %v558_v32  ;;  %v1347_v30 = vand.u32 4294901760, %v1346_v55  ;;  %v4398_v35 = vand.u32 4294901760, %v3743_v1  ;;  %v4397_v32 = vand.u32 4294901760, %v3748_v61 }
  0xca   : > { %v564_v36 = vand.u32 4294901760, %v563_v52  ;;  %v1353_v3 = vsub.f32 %v3727_v47, %v4400_v34  ;;  %v1360_v52 = vsub.f32 %v3734_v54, %v4399_v40  ;;  %v4604_v40 = vld [vmem:[#allocation13_spill] sm:$0xff]  ;;  %v4608_v34 = vld [vmem:[#allocation16_spill] sm:$0xff] }
  0xcb   : > { %v2484_v13 = vpack.c.bf16 %v1347_v30, %v1340_v50 }
  0xcc   : > { %v2307_v55 = vpack.c.bf16 %v576_v28, %v564_v36  ;;  %v1354_v50 = vand.u32 4294901760, %v1353_v3  ;;  %v1361_v30 = vand.u32 4294901760, %v1360_v52  ;;  %v4565_v28 = vpack.c.bf16 %v3309_v29, %v3295_v33  ;;  %v4571_v52 = vld [vmem:[#allocation25_spill] sm:$0xff] }
  0xcd   : > { %v4569_v3 = vpack.c.bf16 %v3335_v2, %v3330_v8 }
  0xce   : > { %v2487_v36 = vpack.c.bf16 %v1361_v30, %v1354_v50  ;;  %v4575_v50 = vpack.c.bf16 %v3389_v20, %v3384_v19  ;;  %v4576_v30 = vpack.c.bf16 %v3417_v15, %v3412_v14 }
  0xcf   : > { %2482 = vmatpush3.bf16.xpose.msra.mxu0 %v2481_v49  ;;  %v587_v49 = vsub.f32 %v3743_v1, %v4398_v35  ;;  %v4603_v35 = vld [vmem:[#allocation12_spill] sm:$0xff] }
  0xd0   : > { %2304 = vmatpush1.bf16.xpose.msra.mxu1 %v2303_v12  ;;  %2483 = vmatprep.subr.bf16.mxu0 %v4438_v45  ;;  %v599_v12 = vsub.f32 %v3748_v61, %v4397_v32  ;;  %v4601_v32 = vld [vmem:[#allocation48_spill] sm:$0xff] }
  0xd1   : > { %2306 = vmatprep.subr.bf16.mxu1 %v2305_v27  ;;  %v588_v27 = vand.u32 4294901760, %v587_v49  ;;  %v4572_v49 = vpack.c.bf16 %v3359_v58, %v3354_v0 }
  0xd2   : > { %v600_v41 = vand.u32 4294901760, %v599_v12  ;;  %v4573_v12 = vpack.c.bf16 %v3369_v4, %v3364_v6 }
  0xd4   : > { %v2311_v16 = vpack.c.bf16 %v600_v41, %v588_v27  ;;  %v4577_v27 = vpack.c.bf16 %v3439_v25, %v3422_v26  ;;  %v4578_v41 = vld [vmem:[#allocation33_spill] sm:$0xff] }
  0xd7   : > { %2485 = vmatpush3.bf16.xpose.msra.mxu0 %v2484_v13  ;;  %v4567_v13 = vld [vmem:[#allocation42_spill] sm:$0xff] }
  0xd8   : > { %2308 = vmatpush1.bf16.xpose.msra.mxu1 %v2307_v55  ;;  %2486 = vmatprep.subr.bf16.mxu0 %v4438_v45  ;;  %v4570_v55 = vpack.c.bf16 %v3349_v10, %v3344_v9 }
  0xd9   : > { %2310 = vmatprep.subr.bf16.mxu1 %v2309_v62  ;;  %v4574_v62 = vpack.c.bf16 %v3379_v48, %v3374_v7 }
  0xdf   : > { %2488 = vmatpush3.bf16.xpose.msra.mxu0 %v2487_v36  ;;  %v4579_v36 = vld [vmem:[#allocation32_spill] sm:$0xff] }
  0xe0   : > { %2312 = vmatpush1.bf16.xpose.msra.mxu1 %v2311_v16  ;;  %2489 = vmatprep.subr.bf16.mxu0 %v4438_v45  ;;  %v4580_v16 = vpack.c.bf16 %v4578_v41, %v4579_v36 }
  0xe1   : > { %2314 = vmatprep.subr.bf16.mxu1 %v4565_v28  ;;  %v4581_v28 = vld [vmem:[#allocation35_spill] sm:$0xff] }
  0xe6   : > { %2107 = vmatmul.mubr.f32.vlgmr.msra.gmra.mrb[0].mxu0 %v4566_v42 }
  0xe7   : > { %637 = vmatmul.mubr.f32.vlgmr.msra.gmra.mrb[0].mxu1 %v4567_v13  ;;  %2491 = vmatpush3.bf16.xpose.msra.mxu0 %v4568_v46  ;;  %v4582_v46 = vld [vmem:[#allocation34_spill] sm:$0xff]  ;;  %v4631_v13 = vand.u32 4294901760, %v3330_v8  ;;  %v4639_v8 = vand.u32 4294901760, %v3359_v58  ;;  %v4645_v58 = vand.u32 4294901760, %v3389_v20  ;;  %v4651_v20 = vand.u32 4294901760, %v4578_v41 }
  0xe8   : > { %2316 = vmatpush1.bf16.xpose.msra.mxu1 %v4569_v3  ;;  %2492 = vmatprep.subr.bf16.mxu0 %v4438_v45  ;;  %v4583_v3 = vpack.c.bf16 %v4581_v28, %v4582_v46 }
  0xe9   : > { %2318 = vmatprep.subr.bf16.mxu1 %v4570_v55  ;;  %2141 = vmatprep.mubr.msk.f32.mxu0 %vm2839_vm0, %v4546_v60  ;;  %v4584_v55 = vld [vmem:[#allocation37_spill] sm:$0xff] }
  0xea   : > { %772 = vmatprep.mubr.f32.mxu1 %v4571_v52 }
  0xef   : > { %2494 = vmatpush3.bf16.xpose.msra.mxu0 %v4572_v49  ;;  %v4585_v49 = vld [vmem:[#allocation36_spill] sm:$0xff] }
  0xf0   : > { %2320 = vmatpush1.bf16.xpose.msra.mxu1 %v4573_v12  ;;  %2495 = vmatprep.subr.bf16.mxu0 %v4438_v45  ;;  %v4586_v12 = vpack.c.bf16 %v4584_v55, %v4585_v49 }
  0xf1   : > { %2322 = vmatprep.subr.bf16.mxu1 %v4574_v62  ;;  %v4587_v62 = vld [vmem:[#allocation40_spill] sm:$0xff] }
  0xf2   : > { %v4657_v41 = vand.u32 4294901760, %v4587_v62 }
  0xf7   : > { %2497 = vmatpush3.bf16.xpose.msra.mxu0 %v4575_v50  ;;  %v4588_v50 = vld [vmem:[#allocation39_spill] sm:$0xff] }
  0xf8   : > { %2324 = vmatpush1.bf16.xpose.msra.mxu1 %v4576_v30  ;;  %2498 = vmatprep.subr.bf16.mxu0 %v4438_v45  ;;  %v4589_v30 = vpack.c.bf16 %v4587_v62, %v4588_v50  ;;  %v4663_v62 = vand.u32 4294901760, %v3570_v24 }
  0xf9   : > { %2326 = vmatprep.subr.bf16.mxu1 %v4577_v27  ;;  %v4590_v27 = vpack.c.bf16 %v4551_v44, %v4550_v18 }
  0xff   : > { %2500 = vmatpush3.bf16.xpose.msra.mxu0 %v4580_v16  ;;  %v4591_v16 = vpack.c.bf16 %v4553_v51, %v4552_v21 }
 0x100   : > { %2328 = vmatpush1.bf16.xpose.msra.mxu1 %v4583_v3  ;;  %2501 = vmatprep.subr.bf16.mxu0 %v4438_v45  ;;  %v4592_v3 = vpack.c.bf16 %v3570_v24, %v4554_v56  ;;  %v4669_v24 = vand.u32 4294901760, %v3642_v53 }
 0x101   : > { %2330 = vmatprep.subr.bf16.mxu1 %v4586_v12  ;;  %v4593_v12 = vpack.c.bf16 %v3602_v22, %v3580_v38 }
 0x107   : > { %2503 = vmatpush3.bf16.xpose.msra.mxu0 %v4589_v30  ;;  %v4594_v30 = vpack.c.bf16 %v4556_v17, %v4555_v37 }
 0x108   : > { %2332 = vmatpush1.bf16.xpose.msra.mxu1 %v4590_v27  ;;  %2504 = vmatprep.subr.bf16.mxu0 %v4438_v45  ;;  %v4595_v27 = vpack.c.bf16 %v3642_v53, %v4557_v23  ;;  %v4675_v53 = vand.u32 4294901760, %v3734_v54 }
 0x109   : > { %2334 = vmatprep.subr.bf16.mxu1 %v4591_v16  ;;  %v4596_v16 = vpack.c.bf16 %v4559_v39, %v4558_v43 }
 0x10f   : > { %2506 = vmatpush3.bf16.xpose.msra.mxu0 %v4592_v3  ;;  %v4597_v3 = vpack.c.bf16 %v4561_v63, %v4560_v57 }
 0x110   : > { %2336 = vmatpush1.bf16.xpose.msra.mxu1 %v4593_v12  ;;  %2507 = vmatprep.subr.bf16.mxu0 %v4438_v45  ;;  %v4598_v12 = vpack.c.bf16 %v3734_v54, %v3727_v47  ;;  %v4681_v54 = vld [vmem:[#allocation14_spill] sm:$0xff] }
 0x111   : > { %2338 = vmatprep.subr.bf16.mxu1 %v4594_v30  ;;  %v4599_v30 = vpack.c.bf16 %v3748_v61, %v3743_v1 }
 0x117   : > { %2509 = vmatpush3.bf16.xpose.msra.mxu0 %v4595_v27  ;;  %v4600_v27 = vld [vmem:[#allocation11_spill] sm:$0xff] }
 0x118   : > { %2340 = vmatpush1.bf16.xpose.msra.mxu1 %v4596_v16  ;;  %2510 = vmatprep.subr.bf16.mxu0 %v4438_v45  ;;  %v4602_v16 = vld [vmem:[#allocation51_spill] sm:$0xff] }
 0x119   : > { %2342 = vmatprep.subr.bf16.mxu1 %v4597_v3  ;;  %v4605_v3 = vld [vmem:[#allocation14_spill] sm:$0xff] }
 0x11f   : > { %2512 = vmatpush3.bf16.xpose.msra.mxu0 %v4598_v12  ;;  %v4606_v12 = vand.u32 4294901760, %v4571_v52  ;;  %v4614_v52 = vld [vmem:[#allocation22_spill] sm:$0xff] }
 0x120   : > { %2344 = vmatpush1.bf16.xpose.msra.mxu1 %v4599_v30  ;;  %2513 = vmatprep.subr.bf16.mxu0 %v4438_v45  ;;  %v4607_v30 = vld [vmem:[#allocation15_spill] sm:$0xff] }
 0x121   : > { %2346 = vmatprep.subr.bf16.mxu1 %v4600_v27 }
 0x126   : > { %2142 = vmatmul.mubr.f32.vlgmr.msra.gmra.mrb[0].mxu0 %v4601_v32 }
 0x127   : > { %775 = vmatmul.mubr.f32.vlgmr.msra.gmra.mrb[0].mxu1 %v4602_v16  ;;  %2515 = vmatpush3.bf16.xpose.msra.mxu0 %v4603_v35  ;;  %v4613_v35 = vld [vmem:[#allocation21_spill] sm:$0xff] }
 0x128   : > { %2348 = vmatpush1.bf16.xpose.msra.mxu1 %v4604_v40  ;;  %2516 = vmatprep.subr.bf16.mxu0 %v4438_v45  ;;  %v4611_v40 = vld [vmem:[#allocation19_spill] sm:$0xff] }
 0x129   : > { %2350 = vmatprep.subr.bf16.mxu1 %v4605_v3  ;;  %2176 = vmatprep.mubr.msk.f32.mxu0 %vm2839_vm0, %v4546_v60  ;;  %v4612_v3 = vld [vmem:[#allocation20_spill] sm:$0xff] }
 0x12a   : > { %879 = vmatprep.mubr.f32.mxu1 %v4606_v12  ;;  %v4615_v12 = vld [vmem:[#allocation23_spill] sm:$0xff] }
 0x12f   : > { %2518 = vmatpush3.bf16.xpose.msra.mxu0 %v4607_v30  ;;  %v4617_v30 = vld [vmem:[#allocation27_spill] sm:$0xff] }
 0x130   : > { %2352 = vmatpush1.bf16.xpose.msra.mxu1 %v4608_v34  ;;  %2519 = vmatprep.subr.bf16.mxu0 %v4438_v45  ;;  %v4616_v34 = vld [vmem:[#allocation26_spill] sm:$0xff] }
 0x131   : > { %2354 = vmatprep.subr.bf16.mxu1 %v4609_v59  ;;  %v4620_v59 = vld [vmem:[#allocation30_spill] sm:$0xff] }
 0x137   : > { %2521 = vmatpush3.bf16.xpose.msra.mxu0 %v4610_v31  ;;  %v4618_v31 = vld [vmem:[#allocation28_spill] sm:$0xff] }
 0x138   : > { %2356 = vmatpush1.bf16.xpose.msra.mxu1 %v4611_v40  ;;  %2522 = vmatprep.subr.bf16.mxu0 %v4438_v45  ;;  %v4619_v40 = vld [vmem:[#allocation29_spill] sm:$0xff] }
 0x139   : > { %2358 = vmatprep.subr.bf16.mxu1 %v4612_v3  ;;  %v4623_v3 = vld [vmem:[#allocation47_spill] sm:$0xff] }
 0x13f   : > { %2524 = vmatpush3.bf16.xpose.msra.mxu0 %v4613_v35  ;;  %v4621_v35 = vld [vmem:[#allocation31_spill] sm:$0xff] }
 0x140   : > { %2360 = vmatpush1.bf16.xpose.msra.mxu1 %v4614_v52  ;;  %2525 = vmatprep.subr.bf16.mxu0 %v4438_v45  ;;  %v4622_v52 = vld [vmem:[#allocation46_spill] sm:$0xff] }
 0x141   : > { %2362 = vmatprep.subr.bf16.mxu1 %v4615_v12 }
 0x147   : > { %2527 = vmatpush3.bf16.xpose.msra.mxu0 %v4616_v34  ;;  %v4624_v34 = vld [vmem:[#allocation50_spill] sm:$0xff] }
 0x148   : > { %2364 = vmatpush1.bf16.xpose.msra.mxu1 %v4617_v30  ;;  %2528 = vmatprep.subr.bf16.mxu0 %v4438_v45  ;;  %v4625_v30 = vand.u32 4294901760, %v3295_v33 }
 0x149   : > { %2366 = vmatprep.subr.bf16.mxu1 %v4618_v31  ;;  %v4626_v31 = vand.u32 4294901760, %v3309_v29  ;;  %v4633_v29 = vand.u32 4294901760, %v3344_v9  ;;  %v4640_v9 = vand.u32 4294901760, %v3364_v6  ;;  %v4646_v6 = vand.u32 4294901760, %v3412_v14 }
 0x14a   : > { %v4652_v14 = vand.u32 4294901760, %v4582_v46  ;;  %v4658_v46 = vand.u32 4294901760, %v4550_v18  ;;  %v4664_v18 = vand.u32 4294901760, %v3580_v38  ;;  %v4670_v38 = vand.u32 4294901760, %v4558_v43 }
 0x14b   : > { %v2377_v12 = vpack.c.bf16 %v4626_v31, %v4625_v30  ;;  %v4634_v31 = vand.u32 4294901760, %v3349_v10  ;;  %v4641_v10 = vand.u32 4294901760, %v3369_v4  ;;  %v4647_v4 = vand.u32 4294901760, %v3417_v15 }
 0x14c   : > { %v4653_v15 = vand.u32 4294901760, %v4581_v28  ;;  %v4659_v28 = vand.u32 4294901760, %v4551_v44  ;;  %v4665_v44 = vand.u32 4294901760, %v3602_v22  ;;  %v4671_v22 = vand.u32 4294901760, %v4559_v39 }
 0x14d   : > { %v2381_v30 = vpack.c.bf16 %v4634_v31, %v4633_v29  ;;  %v4676_v43 = vand.u32 4294901760, %v3743_v1  ;;  %v4677_v39 = vand.u32 4294901760, %v3748_v61  ;;  %v4682_v1 = vld [vmem:[#allocation15_spill] sm:$0xff]  ;;  %v4683_v61 = vld [vmem:[#allocation16_spill] sm:$0xff] }
 0x14f   : > { %2530 = vmatpush3.bf16.xpose.msra.mxu0 %v4619_v40  ;;  %v4627_v40 = vld [vmem:[#allocation55_spill] sm:$0xff] }
 0x150   : > { %2368 = vmatpush1.bf16.xpose.msra.mxu1 %v4620_v59  ;;  %2531 = vmatprep.subr.bf16.mxu0 %v4438_v45  ;;  %v4628_v59 = vld [vmem:[#allocation56_spill] sm:$0xff] }
 0x151   : > { %2370 = vmatprep.subr.bf16.mxu1 %v4621_v35 }
 0x157   : > { %2533 = vmatpush3.bf16.xpose.msra.mxu0 %v4622_v52  ;;  %v4629_v52 = vand.u32 4294901760, %v3314_v11  ;;  %v4637_v11 = vld [vmem:[#allocation24_spill] sm:$0xff] }
 0x158   : > { %2372 = vmatpush1.bf16.xpose.msra.mxu1 %v4623_v3  ;;  %2534 = vmatprep.subr.bf16.mxu0 %v4438_v45  ;;  %v4630_v3 = vand.u32 4294901760, %v3319_v5  ;;  %v4638_v5 = vand.u32 4294901760, %v3354_v0  ;;  %v4644_v0 = vand.u32 4294901760, %v3384_v19  ;;  %v4650_v19 = vand.u32 4294901760, %v4579_v36 }
 0x159   : > { %2374 = vmatprep.subr.bf16.mxu1 %v4624_v34  ;;  %v4632_v34 = vand.u32 4294901760, %v3335_v2  ;;  %v4656_v36 = vand.u32 4294901760, %v4588_v50  ;;  %v4662_v50 = vand.u32 4294901760, %v4554_v56  ;;  %v4668_v56 = vand.u32 4294901760, %v4557_v23 }
 0x15a   : > { %v2538_v35 = vpack.c.bf16 %v4630_v3, %v4629_v52  ;;  %v2541_v2 = vpack.c.bf16 %v4639_v8, %v4638_v5  ;;  %v2547_v52 = vpack.c.bf16 %v4651_v20, %v4650_v19  ;;  %v2399_v8 = vpack.c.bf16 %v4665_v44, %v4664_v18  ;;  %v4697_v19 = vld [vmem:[#allocation46_spill] sm:$0xff]  ;;  %v4698_v20 = vld [vmem:[#allocation47_spill] sm:$0xff] }
 0x15b   : > { %v2379_v33 = vpack.c.bf16 %v4632_v34, %v4631_v13  ;;  %v2383_v34 = vpack.c.bf16 %v4641_v10, %v4640_v9  ;;  %v2544_v13 = vpack.c.bf16 %v4645_v58, %v4644_v0  ;;  %v2550_v31 = vpack.c.bf16 %v4657_v41, %v4656_v36  ;;  %v4686_v0 = vld [vmem:[#allocation19_spill] sm:$0xff]  ;;  %v4687_v58 = vld [vmem:[#allocation20_spill] sm:$0xff] }
 0x15c   : > { %v2553_v5 = vpack.c.bf16 %v4663_v62, %v4662_v50  ;;  %v2556_v9 = vpack.c.bf16 %v4669_v24, %v4668_v56  ;;  %v2403_v10 = vpack.c.bf16 %v4671_v22, %v4670_v38  ;;  %v4674_v23 = vand.u32 4294901760, %v3727_v47  ;;  %v4680_v47 = vld [vmem:[#allocation13_spill] sm:$0xff] }
 0x15f   : > { %2536 = vmatpush3.bf16.xpose.msra.mxu0 %v4627_v40 }
 0x160   : > { %2376 = vmatpush1.bf16.xpose.msra.mxu1 %v4628_v59  ;;  %2537 = vmatprep.subr.bf16.mxu0 %v4438_v45  ;;  %v4635_v59 = vand.u32 4294901760, %v4601_v32 }
 0x161   : > { %2378 = vmatprep.subr.bf16.mxu1 %v2377_v12  ;;  %v4636_v12 = vand.u32 4294901760, %v4602_v16  ;;  %v2387_v16 = vpack.c.bf16 %v4647_v4, %v4646_v6  ;;  %v4691_v6 = vld [vmem:[#allocation26_spill] sm:$0xff]  ;;  %v4692_v4 = vld [vmem:[#allocation27_spill] sm:$0xff] }
 0x166   : > { %2177 = vmatmul.mubr.f32.vlgmr.msra.gmra.mrb[0].mxu0 %v4635_v59  ;;  %v4642_v59 = vand.u32 4294901760, %v3374_v7  ;;  %v4648_v7 = vand.u32 4294901760, %v3422_v26  ;;  %v4654_v26 = vand.u32 4294901760, %v4585_v49  ;;  %v4660_v49 = vand.u32 4294901760, %v4552_v21 }
 0x167   : > { %883 = vmatmul.mubr.f32.vlgmr.msra.gmra.mrb[0].mxu1 %v4636_v12  ;;  %2539 = vmatpush3.bf16.xpose.msra.mxu0 %v2538_v35  ;;  %v4643_v35 = vand.u32 4294901760, %v3379_v48  ;;  %v4649_v48 = vand.u32 4294901760, %v3439_v25  ;;  %v4655_v25 = vand.u32 4294901760, %v4584_v55  ;;  %v4661_v55 = vand.u32 4294901760, %v4553_v51 }
 0x168   : > { %2380 = vmatpush1.bf16.xpose.msra.mxu1 %v2379_v33  ;;  %2540 = vmatprep.subr.bf16.mxu0 %v4438_v45  ;;  %v2391_v33 = vpack.c.bf16 %v4653_v15, %v4652_v14  ;;  %v4666_v21 = vand.u32 4294901760, %v4555_v37  ;;  %v4667_v51 = vand.u32 4294901760, %v4556_v17  ;;  %v4672_v37 = vand.u32 4294901760, %v4560_v57  ;;  %v4678_v57 = vld [vmem:[#allocation42_spill] sm:$0xff]  ;;  %v4700_v14 = vld [vmem:[#allocation56_spill] sm:$0xff] }
 0x169   : > { %2382 = vmatprep.subr.bf16.mxu1 %v2381_v30  ;;  %2211 = vmatprep.mubr.msk.f32.mxu0 %vm2839_vm0, %v4546_v60  ;;  %v2385_v32 = vpack.c.bf16 %v4643_v35, %v4642_v59  ;;  %v2389_v3 = vpack.c.bf16 %v4649_v48, %v4648_v7  ;;  %v2393_v29 = vpack.c.bf16 %v4655_v25, %v4654_v26  ;;  %v4673_v17 = vand.u32 4294901760, %v4561_v63  ;;  %v4679_v63 = vld [vmem:[#allocation12_spill] sm:$0xff]  ;;  %v4694_v7 = vld [vmem:[#allocation29_spill] sm:$0xff]  ;;  %v4695_v48 = vld [vmem:[#allocation30_spill] sm:$0xff] }
 0x16a   : > { %1049 = vmatprep.mubr.f32.mxu1 %v4637_v11  ;;  %v2395_v30 = vpack.c.bf16 %v4659_v28, %v4658_v46  ;;  %v2397_v12 = vpack.c.bf16 %v4661_v55, %v4660_v49  ;;  %v2559_v59 = vpack.c.bf16 %v4675_v53, %v4674_v23  ;;  %v2407_v35 = vpack.c.bf16 %v4677_v39, %v4676_v43  ;;  %v1932_v15 = vld [vmem:[%s239_s18] ss:$0 sm:$0xff] }
 0x16f   : > { %2542 = vmatpush3.bf16.xpose.msra.mxu0 %v2541_v2  ;;  %v2401_v2 = vpack.c.bf16 %v4667_v51, %v4666_v21 }
 0x170   : > { %2384 = vmatpush1.bf16.xpose.msra.mxu1 %v2383_v34  ;;  %2543 = vmatprep.subr.bf16.mxu0 %v4438_v45  ;;  %v2405_v34 = vpack.c.bf16 %v4673_v17, %v4672_v37 }
 0x171   : > { %2386 = vmatprep.subr.bf16.mxu1 %v2385_v32  ;;  %v4685_v32 = vld [vmem:[#allocation18_spill] sm:$0xff] }
 0x177   : > { %2545 = vmatpush3.bf16.xpose.msra.mxu0 %v2544_v13  ;;  %v4688_v13 = vld [vmem:[#allocation21_spill] sm:$0xff] }
 0x178   : > { %2388 = vmatpush1.bf16.xpose.msra.mxu1 %v2387_v16  ;;  %2546 = vmatprep.subr.bf16.mxu0 %v4438_v45  ;;  %v4693_v16 = vld [vmem:[#allocation28_spill] sm:$0xff] }
 0x179   : > { %2390 = vmatprep.subr.bf16.mxu1 %v2389_v3  ;;  %v4696_v3 = vld [vmem:[#allocation31_spill] sm:$0xff] }
 0x17f   : > { %2548 = vmatpush3.bf16.xpose.msra.mxu0 %v2547_v52  ;;  %v4699_v52 = vld [vmem:[#allocation50_spill] sm:$0xff] }
 0x180   : > { %2392 = vmatpush1.bf16.xpose.msra.mxu1 %v2391_v33  ;;  %2549 = vmatprep.subr.bf16.mxu0 %v4438_v45 }
 0x181   : > { %2394 = vmatprep.subr.bf16.mxu1 %v2393_v29 }
 0x187   : > { %2551 = vmatpush3.bf16.xpose.msra.mxu0 %v2550_v31 }
 0x188   : > { %2396 = vmatpush1.bf16.xpose.msra.mxu1 %v2395_v30  ;;  %2552 = vmatprep.subr.bf16.mxu0 %v4438_v45 }
 0x189   : > { %2398 = vmatprep.subr.bf16.mxu1 %v2397_v12 }
 0x18f   : > { %2554 = vmatpush3.bf16.xpose.msra.mxu0 %v2553_v5 }
 0x190   : > { %2400 = vmatpush1.bf16.xpose.msra.mxu1 %v2399_v8  ;;  %2555 = vmatprep.subr.bf16.mxu0 %v4438_v45 }
 0x191   : > { %2402 = vmatprep.subr.bf16.mxu1 %v2401_v2 }
 0x197   : > { %2557 = vmatpush3.bf16.xpose.msra.mxu0 %v2556_v9 }
 0x198   : > { %2404 = vmatpush1.bf16.xpose.msra.mxu1 %v2403_v10  ;;  %2558 = vmatprep.subr.bf16.mxu0 %v4438_v45 }
 0x199   : > { %2406 = vmatprep.subr.bf16.mxu1 %v2405_v34 }
 0x19f   : > { %2560 = vmatpush3.bf16.xpose.msra.mxu0 %v2559_v59 }
 0x1a0   : > { %2408 = vmatpush1.bf16.xpose.msra.mxu1 %v2407_v35  ;;  %2561 = vmatprep.subr.bf16.mxu0 %v4438_v45 }
 0x1a1   : > { %2410 = vmatprep.subr.bf16.mxu1 %v4600_v27  ;;  %v4684_v27 = vld [vmem:[#allocation17_spill] sm:$0xff] }
 0x1a6   : > { %2212 = vmatmul.mubr.f32.vlgmr.msra.gmra.mrb[0].mxu0 %v4566_v42 }
 0x1a7   : > { %1051 = vmatmul.mubr.f32.vlgmr.msra.gmra.mrb[0].mxu1 %v4678_v57  ;;  %2563 = vmatpush3.bf16.xpose.msra.mxu0 %v4679_v63 }
 0x1a8   : > { %2412 = vmatpush1.bf16.xpose.msra.mxu1 %v4680_v47  ;;  %2564 = vmatprep.subr.bf16.mxu0 %v4438_v45 }
 0x1a9   : > { %2414 = vmatprep.subr.bf16.mxu1 %v4681_v54  ;;  %2246 = vmatprep.mubr.msk.f32.mxu0 %vm2839_vm0, %v4546_v60  ;;  %v4689_v60 = vld [vmem:[#allocation22_spill] sm:$0xff] }
 0x1aa   : > { %1153 = vmatprep.mubr.f32.mxu1 %v4637_v11  ;;  %v4690_v11 = vld [vmem:[#allocation23_spill] sm:$0xff] }
 0x1af   : > { %2566 = vmatpush3.bf16.xpose.msra.mxu0 %v4682_v1 }
 0x1b0   : > { %2416 = vmatpush1.bf16.xpose.msra.mxu1 %v4683_v61  ;;  %2567 = vmatprep.subr.bf16.mxu0 %v4438_v45 }
 0x1b1   : > { %2418 = vmatprep.subr.bf16.mxu1 %v4684_v27 }
 0x1b7   : > { %2569 = vmatpush3.bf16.xpose.msra.mxu0 %v4685_v32 }
 0x1b8   : > { %2420 = vmatpush1.bf16.xpose.msra.mxu1 %v4686_v0  ;;  %2570 = vmatprep.subr.bf16.mxu0 %v4438_v45 }
 0x1b9   : > { %2422 = vmatprep.subr.bf16.mxu1 %v4687_v58 }
 0x1bf   : > { %2572 = vmatpush3.bf16.xpose.msra.mxu0 %v4688_v13 }
 0x1c0   : > { %2424 = vmatpush1.bf16.xpose.msra.mxu1 %v4689_v60  ;;  %2573 = vmatprep.subr.bf16.mxu0 %v4438_v45 }
 0x1c1   : > { %2426 = vmatprep.subr.bf16.mxu1 %v4690_v11 }
 0x1c7   : > { %2575 = vmatpush3.bf16.xpose.msra.mxu0 %v4691_v6 }
 0x1c8   : > { %2428 = vmatpush1.bf16.xpose.msra.mxu1 %v4692_v4  ;;  %2576 = vmatprep.subr.bf16.mxu0 %v4438_v45 }
 0x1c9   : > { %2430 = vmatprep.subr.bf16.mxu1 %v4693_v16 }
 0x1cf   : > { %2578 = vmatpush3.bf16.xpose.msra.mxu0 %v4694_v7 }
 0x1d0   : > { %2432 = vmatpush1.bf16.xpose.msra.mxu1 %v4695_v48  ;;  %2579 = vmatprep.subr.bf16.mxu0 %v4438_v45 }
 0x1d1   : > { %2434 = vmatprep.subr.bf16.mxu1 %v4696_v3 }
 0x1d7   : > { %2581 = vmatpush3.bf16.xpose.msra.mxu0 %v4697_v19 }
 0x1d8   : > { %2436 = vmatpush1.bf16.xpose.msra.mxu1 %v4698_v20  ;;  %2582 = vmatprep.subr.bf16.mxu0 %v4438_v45 }
 0x1d9   : > { %2438 = vmatprep.subr.bf16.mxu1 %v4699_v52 }
 0x1df   : > { %2584 = vmatpush3.bf16.xpose.msra.mxu0 %v4627_v40 }
 0x1e0   : > { %2440 = vmatpush1.bf16.xpose.msra.mxu1 %v4700_v14 }
 0x1e6   : > { %2247 = vmatmul.mubr.f32.vlgmr.msra.gmra.mrb[0].mxu0 %v4566_v42 }
 0x1e7   : > { %1155 = vmatmul.mubr.f32.vlgmr.msra.gmra.mrb[0].mxu1 %v4678_v57 }
 0x2b9   : > { %v1797_v45 = vpop.f32.mrb[0].mxu0 }
 0x2ba   : > { %v1156_v33 = vpop.f32.mrb[0].mxu1  ;;  %v2248_v26 = vpop.f32.mrb[1].mxu0 }
 0x2bb   : > { %v2585_v40 = vadd.f32 %v1932_v15, %v1156_v33  ;;  %v1158_v42 = vpop.f32.mrb[1].mxu1 }
 0x2bd   : > { %v2586_v25 = vadd.f32 %v2585_v40, %v1797_v45 }
 0x2bf   : > { %1801 = vst [vmem:[%s235_s5] sm:$0xff] %v2586_v25 }
 0x2c0   : > { %2759 = shalt.err (!%p2756_p13)
}
 0x2c1   : > { %s2760_s9 = scalar_lea.hbm %s4197_s19, 128  ;;  %s2764_s23 = scalar_lea.hbm %s4249_s3, 256 }
 0x2c2   : > { %p2761_p2 = scmp.ne.s32.totalorder %s4197_s19, %s2760_s9  ;;  %p2765_p4 = scmp.lt.u32.totalorder %s4197_s19, %s4249_s3 }
 0x2c3   : > { %p2766_p8 = scmp.lt.u32.totalorder %s2764_s23, %s2760_s9  ;;  %p2768_p10 = scmp.lt.u32.totalorder %s2760_s9, %s4197_s19 }
 0x2c4   : > { %p2762_p6 = pnand %p2761_p2, %p4701_p11 }
 0x2c5   : > { %p2767_p5 = por %p2766_p8, %p2765_p4 }
 0x2c6   : > { %p2763_p12 = pneg %p2762_p6 }
 0x2c7   : > { %p2769_p1 = por %p2768_p10, %p2767_p5 }
 0x2c9   : > { %p2770_p0 = pnand %p2769_p1, %p2763_p12 }
 0x2cb   : > { %2773 = shalt.err (!%p2770_p0)
}
 0x2cc   : > { %2616 = dma.vmem_to_hbm [thread:$0]  (%p4701_p11), %s4199_s20, 128, %s4197_s19, %s1803_s27  }
 0x2cd PF: > { %s1830_s18 = sand.u32 1, %s2812_s12   ;;  %p4702_p9 = scmp.ne.s32.totalorder %s4407_s25, 0 }
 0x2ce   : > { %p4703_p3 = scmp.ge.s32.totalorder %s2832_s17, 2  ;;  %s1831_s22 = scalar_lea.sflag [#allocation4], %s1830_s18 }
 0x2d0   : > { %p2627_p7 = pnand %p4703_p3, %p4702_p9 }
 0x2d2   : > { %2807 = dma.done.wait (!%p2627_p7), %s1831_s22, 128  }
 0x2d3   : > { %2809 = vsyncadd (!%p2627_p7), %s1831_s22, 4294967168  ;;  %s20_s17 = sadd.s32 1, %s2832_s17   ;;  %s4704_s12 = smov %s2816_s13 }
 0x2d4   : > { %p17_p13 = scmp.ge.s32.totalorder %s20_s17, 4   ;;  %s4705_s13 = smov %s2820_s14 }
 0x2d5   : > { %s4706_s14 = smov %s2981_s28  ;;  %s4707_s15 = smov %s2828_s16 }
 0x2d6   : > { %s4708_s16 = smov %s4710_s4  ;;  %19 = sbr.rel (!%p17_p13) target bundleno = 7 (0x7), region = 86 }
 0x2dd   :  { %1836 = vsyncpa [#allocation3], 1 }
 0x2de   :  { %1838 = vsyncpa [#allocation3 + $0x1], 1 }
 0x2df   :  { %1839 = vsyncpa [#allocation6], 1 }
 0x2e0   :  { %1841 = vsyncpa [#allocation6 + $0x1], 1 }
 0x2e1   :  { %1842 = vsyncpa [#allocation4], 1 }
 0x2e2   :  { %1844 = vsyncpa [#allocation4 + $0x1], 1 }

</bundles_post_ra>
